<compile_context>
chip_gen: v7x
topology: tpu7x:2x2x1
jax: 0.10.0
libtpu: 0.0.40
codegen_flags: <defaults>
</compile_context>

<pallas_src>
import functools

import jax
import jax.numpy as jnp
from jax import lax
from jax.experimental import pallas as pl
from jax.experimental.pallas import tpu as pltpu


def sa_kernel(gammas_ref, x_ref, wqk_ref, u_ref, wv_ref, bv_ref, o_ref,
              *, mxu_dtype, kv_chunk, precision):
    f32 = jnp.float32

    def mm(lhs, rhs, dims):
        return lax.dot_general(lhs, rhs, (dims, ((), ())),
                               precision=precision,
                               preferred_element_type=f32)

    gc = gammas_ref[0, 0]                       # CAM gamma (SMEM scalar)
    gp = gammas_ref[1, 0]                       # PAM gamma (SMEM scalar)
    wqk = wqk_ref[...].astype(mxu_dtype)        # (C, C)  = Wq^T Wk
    u = u_ref[...]                              # (C, 1)  = Wk^T bq, f32
    wv = wv_ref[...].astype(mxu_dtype)          # (C, C)
    bv = bv_ref[...]                            # (C, 1)  f32

    bb, C, L = x_ref.shape
    n_kv = L // kv_chunk                        # static

    def per_item(b, carry):
        x = x_ref[b].astype(f32)                # (C, L) f32 (residual path)
        xm = x.astype(mxu_dtype)                # MXU operand copy

        # -------- CAM: channel attention (C x C) --------
        # energy = x @ x^T (transpose folded: contract last/last)
        energy = mm(xm, xm, ((1,), (1,)))                              # (C, C)
        # softmax(row_max - energy) == exp(row_min - energy)/sum (one reduction)
        e = jnp.exp(jnp.min(energy, axis=-1, keepdims=True) - energy)
        attn_c = e * pl.reciprocal(jnp.sum(e, axis=-1, keepdims=True))  # exact
        cam = gc * mm(attn_c.astype(mxu_dtype), xm, ((1,), (0,))) + x   # (C, L)

        # -------- PAM: position attention, flash-tiled over key chunks --------
        # a[d, q] = sum_c Wqk[c, d] x[c, q] + u[d]  (folded Q/K projections;
        # per-row terms and constants cancel inside the row softmax)
        a = (mm(wqk, xm, ((0,), (0,))) + u).astype(mxu_dtype)          # (C, L)

        def kv_step(kc, state):
            m_run, l_run, acc = state
            start = pl.multiple_of(kc * kv_chunk, kv_chunk)
            xk = x_ref[b, :, pl.ds(start, kv_chunk)].astype(mxu_dtype)  # (C, TK)
            # scores[m, q] = sum_d xk[d, m] a[d, q]  (keys on sublanes,
            # queries on lanes -> all broadcasts below are lane-aligned (1, L))
            scores = mm(xk, a, ((0,), (0,)))                           # (TK, L)
            m_new = jnp.maximum(m_run,
                                jnp.max(scores, axis=0, keepdims=True))  # (1, L)
            alpha = jnp.exp(m_run - m_new)                             # (1, L)
            p = jnp.exp(scores - m_new)                                # (TK, L) f32
            l_new = alpha * l_run + jnp.sum(p, axis=0, keepdims=True)
            # Flash-style: cast probabilities right before the MXU matmul.
            acc_new = alpha * acc + mm(xk, p.astype(mxu_dtype), ((1,), (0,)))
            return m_new, l_new, acc_new

        init = (jnp.full((1, L), -jnp.inf, f32),
                jnp.zeros((1, L), f32),
                jnp.zeros((C, L), f32))
        _, l_fin, acc_fin = lax.fori_loop(0, n_kv, kv_step, init)
        # Deferred normalization: scale the (C, L) accumulator once.
        s = acc_fin * pl.reciprocal(l_fin)                             # (C, L)
        # Wv (x attn^T) + bv == (Wv x + bv) attn^T  (softmax rows sum to 1)
        pam = gp * (mm(wv, s.astype(mxu_dtype), ((1,), (0,))) + bv) + x

        o_ref[b] = ((cam + pam) * 0.5).astype(o_ref.dtype)
        return carry

    lax.fori_loop(0, bb, per_item, 0)


def _vmem_capacity_bytes():
    try:
        return int(pltpu.get_tpu_info().vmem_capacity_bytes)
    except Exception:
        return 64 * 1024 * 1024          # conservative (v7x per-core VMEM)


def _tensorcores_per_device():
    """Best-effort TensorCore count sharing the 'parallel' grid axis."""
    try:
        kind = jax.devices()[0].device_kind.lower()
    except Exception:
        return 1
    return 2 if any(t in kind for t in ("v2", "v3", "v4", "v7", "7x")) else 1


def _pick_kv_chunk(L, target=512):
    """Lane-aligned PAM key-chunk size (flash tiling of the (L, L) scores)."""
    if L <= target:
        return L
    for c in (512, 256, 128):
        if L % c == 0:
            return c
    return L    # no friendly divisor: fall back to one monolithic chunk


def _pick_block_batch(B, C, L, kv_chunk, budget_bytes, cores=1):
    """Largest batch-block Bb (divisor of B) whose double-buffered I/O plus one
    item's live set fits the budget; on multi-TC parts prefer a step count the
    cores can split evenly."""
    io_per_item = 2 * 2 * C * L * 4                       # x-in + out, double-buffered
    live = (4 * (6 * C * L + 2 * kv_chunk * L + 3 * C * C)
            + 2 * (3 * C * L + kv_chunk * L))             # one item's f32+bf16 temps
    avail = max(budget_bytes - live, io_per_item)
    cands = [d for d in range(1, B + 1) if B % d == 0 and d * io_per_item <= avail]
    if not cands:
        return 1
    if cores > 1:
        balanced = [d for d in cands if (B // d) % cores == 0]
        if balanced:
            return max(balanced)
    return max(cands)


def sa_module(x, params, *, mxu_dtype=jnp.bfloat16):
    B, C, L = x.shape
    f32 = jnp.float32

    wq = params["wq"].astype(f32)                  # (Cq, C)
    wk = params["wk"].astype(f32)                  # (Cq, C)
    bq = params["bq"].astype(f32)                  # (Cq,)
    # Host-side fold of the Q/K 1x1 convs (bk and per-row constants cancel in
    # the row softmax, so they are not needed).
    wqk = jnp.matmul(wq.T, wk, precision="highest")                 # (C, C)
    u = jnp.matmul(wk.T, bq, precision="highest").reshape(C, 1)     # (C, 1)
    wv = params["wv"].astype(f32)                                   # (C, C)
    bv = params["bv"].astype(f32).reshape(C, 1)
    gammas = jnp.stack([params["gamma_cam"][0],
                        params["gamma_pam"][0]]).reshape(2, 1).astype(f32)

    kv_chunk = _pick_kv_chunk(L)
    vmem_limit = int(min(_vmem_capacity_bytes() * 3 // 4, 100 * 1024 * 1024))
    Bb = _pick_block_batch(B, C, L, kv_chunk,
                           budget_bytes=vmem_limit // 2,
                           cores=_tensorcores_per_device())

    precision = lax.Precision.HIGHEST if mxu_dtype == jnp.float32 else None
    kernel = functools.partial(sa_kernel, mxu_dtype=mxu_dtype,
                               kv_chunk=kv_chunk, precision=precision)

    cost = pl.CostEstimate(
        flops=int(B * (8 * C * C * L + 4 * C * L * L)),
        transcendentals=int(B * (C * C + L * L + 2 * L)),
        bytes_accessed=int(4 * (2 * B * C * L + 2 * C * C + 3 * C + 2)))

    return pl.pallas_call(
        kernel,
        out_shape=jax.ShapeDtypeStruct((B, C, L), x.dtype),
        grid=(B // Bb,),
        in_specs=[
            pl.BlockSpec(memory_space=pltpu.MemorySpace.SMEM),   # gammas (2, 1)
            pl.BlockSpec((Bb, C, L), lambda i: (i, 0, 0)),       # x
            pl.BlockSpec((C, C), lambda i: (0, 0)),              # Wq^T Wk
            pl.BlockSpec((C, 1), lambda i: (0, 0)),              # Wk^T bq
            pl.BlockSpec((C, C), lambda i: (0, 0)),              # Wv
            pl.BlockSpec((C, 1), lambda i: (0, 0)),              # bv
        ],
        out_specs=pl.BlockSpec((Bb, C, L), lambda i: (i, 0, 0)),
        compiler_params=pltpu.CompilerParams(
            dimension_semantics=("parallel",),
            vmem_limit_bytes=vmem_limit),
        cost_estimate=cost,
    )(gammas, x, wqk, u, wv, bv)


def sa_reference(x, params):
    """Pure-JAX reference mirroring the PyTorch forward (highest precision)."""
    hp = lax.Precision.HIGHEST
    gc = params["gamma_cam"][0]
    gp = params["gamma_pam"][0]
    # CAM
    energy = jnp.einsum("bcl,bdl->bcd", x, x, precision=hp)
    energy_new = jnp.max(energy, -1, keepdims=True) - energy
    attn_c = jax.nn.softmax(energy_new, axis=-1)
    cam = gc * jnp.einsum("bcd,bdl->bcl", attn_c, x, precision=hp) + x
    # PAM (1x1 Conv1d == channel matmul + bias)
    q = jnp.einsum("oc,bcl->bol", params["wq"], x, precision=hp) + params["bq"][None, :, None]
    k = jnp.einsum("oc,bcl->bol", params["wk"], x, precision=hp) + params["bk"][None, :, None]
    v = jnp.einsum("oc,bcl->bol", params["wv"], x, precision=hp) + params["bv"][None, :, None]
    energy_p = jnp.einsum("bol,bom->blm", q, k, precision=hp)
    attn_p = jax.nn.softmax(energy_p, axis=-1)
    pam = gp * jnp.einsum("bcm,blm->bcl", v, attn_p, precision=hp) + x
    return (cam + pam) / 2.0


if __name__ == "__main__":
    B, C, L = 8, 32, 128          # batch, channels, sequence length (L = H*W)
    Cq = C // 8

    key = jax.random.PRNGKey(0)
    kx, kq, kbq, kk, kbk, kv, kbv = jax.random.split(key, 7)
    x = jax.random.normal(kx, (B, C, L), dtype=jnp.float32)

    # The module's __init__ sets gamma=0 (which zeroes the attention branches);
    # use nonzero gammas so the attention path is exercised, and separately
    # check the gamma=0 identity below.
    params = {
        "wq": 0.1 * jax.random.normal(kq, (Cq, C), dtype=jnp.float32),
        "bq": 0.1 * jax.random.normal(kbq, (Cq,), dtype=jnp.float32),
        "wk": 0.1 * jax.random.normal(kk, (Cq, C), dtype=jnp.float32),
        "bk": 0.1 * jax.random.normal(kbk, (Cq,), dtype=jnp.float32),
        "wv": 0.1 * jax.random.normal(kv, (C, C), dtype=jnp.float32),
        "bv": 0.1 * jax.random.normal(kbv, (C,), dtype=jnp.float32),
        "gamma_cam": jnp.array([0.5], dtype=jnp.float32),
        "gamma_pam": jnp.array([0.25], dtype=jnp.float32),
    }

    ref = sa_reference(x, params)

    # Exact path: f32 MXU operands at HIGHEST precision -> tight tolerance.
    out_f32 = jax.block_until_ready(sa_module(x, params, mxu_dtype=jnp.float32))
    assert out_f32.shape == (B, C, L)
    assert jnp.allclose(out_f32, ref, atol=1e-3, rtol=1e-3), (
        "f32 path mismatch, max abs diff = "
        f"{float(jnp.max(jnp.abs(out_f32 - ref)))}")

    # Default fast path: bf16 MXU operands, f32 accumulation / softmax math.
    # bf16-rounded attention logits shift the softmax slightly -> bf16-level tol.
    out_bf16 = jax.block_until_ready(sa_module(x, params))
    assert jnp.allclose(out_bf16, ref, atol=5e-2, rtol=5e-2), (
        "bf16 path mismatch, max abs diff = "
        f"{float(jnp.max(jnp.abs(out_bf16 - ref)))}")

    # gamma == 0 (the module's init value) must reduce to the identity.
    params0 = dict(params,
                   gamma_cam=jnp.zeros((1,), jnp.float32),
                   gamma_pam=jnp.zeros((1,), jnp.float32))
    out0 = jax.block_until_ready(sa_module(x, params0))
    assert jnp.allclose(out0, x, atol=1e-5, rtol=1e-5), "gamma=0 not identity"

    print("KERNEL_OK")
</pallas_src>

<mosaic_0001>
module attributes {stable_mosaic.version = 11 : i64} {
  func.func @sa_kernel(%arg0: i32, %arg1: memref<2x1xf32, #tpu.memory_space<smem>>, %arg2: memref<8x32x128xf32, #tpu.memory_space<vmem>>, %arg3: memref<32x32xf32, #tpu.memory_space<vmem>>, %arg4: memref<32x1xf32, #tpu.memory_space<vmem>>, %arg5: memref<32x32xf32, #tpu.memory_space<vmem>>, %arg6: memref<32x1xf32, #tpu.memory_space<vmem>>, %arg7: memref<8x32x128xf32, #tpu.memory_space<vmem>>) attributes {dimension_semantics = [#tpu.dimension_semantics<parallel>], iteration_bounds = array<i64: 1>, scalar_prefetch = 0 : i64, scratch_operands = 0 : i64, tpu.core_type = #tpu.core_type<tc>, window_params = [{transform_indices = @transform_0, window_bounds = array<i64: 2, 1>}, {transform_indices = @transform_1, window_bounds = array<i64: 8, 32, 128>}, {pipeline_mode = #tpu.pipeline_mode<synchronous>, transform_indices = @transform_2, window_bounds = array<i64: 32, 32>}, {pipeline_mode = #tpu.pipeline_mode<synchronous>, transform_indices = @transform_3, window_bounds = array<i64: 32, 1>}, {pipeline_mode = #tpu.pipeline_mode<synchronous>, transform_indices = @transform_4, window_bounds = array<i64: 32, 32>}, {pipeline_mode = #tpu.pipeline_mode<synchronous>, transform_indices = @transform_5, window_bounds = array<i64: 32, 1>}, {transform_indices = @transform_6, window_bounds = array<i64: 8, 32, 128>}]} {
    %c0 = arith.constant 0 : index
    %c0_0 = arith.constant 0 : index
    %0 = memref.load %arg1[%c0, %c0_0] : memref<2x1xf32, #tpu.memory_space<smem>>
    %c1 = arith.constant 1 : index
    %c0_1 = arith.constant 0 : index
    %1 = memref.load %arg1[%c1, %c0_1] : memref<2x1xf32, #tpu.memory_space<smem>>
    %c0_2 = arith.constant 0 : index
    %c0_3 = arith.constant 0 : index
    %2 = vector.load %arg3[%c0_2, %c0_3] : memref<32x32xf32, #tpu.memory_space<vmem>>, vector<32x32xf32>
    %c0_4 = arith.constant 0 : index
    %c0_5 = arith.constant 0 : index
    %3 = vector.load %arg4[%c0_4, %c0_5] : memref<32x1xf32, #tpu.memory_space<vmem>>, vector<32x1xf32>
    %c0_6 = arith.constant 0 : index
    %c0_7 = arith.constant 0 : index
    %4 = vector.load %arg5[%c0_6, %c0_7] : memref<32x32xf32, #tpu.memory_space<vmem>>, vector<32x32xf32>
    %c0_8 = arith.constant 0 : index
    %c0_9 = arith.constant 0 : index
    %5 = vector.load %arg6[%c0_8, %c0_9] : memref<32x1xf32, #tpu.memory_space<vmem>>, vector<32x1xf32>
    %c0_i32 = arith.constant 0 : i32
    %c8_i32 = arith.constant 8 : i32
    %6 = arith.addi %c0_i32, %c8_i32 : i32
    %c1_i32 = arith.constant 1 : i32
    scf.for %arg8 = %c0_i32 to %6 step %c1_i32  : i32 {
      %7 = arith.index_cast %arg8 : i32 to index
      %c0_11 = arith.constant 0 : index
      %c0_12 = arith.constant 0 : index
      %8 = vector.load %arg2[%7, %c0_11, %c0_12] : memref<8x32x128xf32, #tpu.memory_space<vmem>>, vector<1x32x128xf32>
      %9 = vector.shape_cast %8 : vector<1x32x128xf32> to vector<32x128xf32>
      %cst = arith.constant dense<0.000000e+00> : vector<32x32xf32>
      %10 = tpu.matmul %9, %9, %cst {dimension_numbers = #tpu.dot_dimension_numbers<[1], [1], [0], [0], [0, 0, 1, 0], [], []>, precision = #tpu.contract_precision<fp32>} : vector<32x128xf32>, vector<32x128xf32>, vector<32x32xf32> -> vector<32x32xf32>
      %cst_13 = arith.constant dense<0x7F800000> : vector<32xf32>
      %11 = vector.multi_reduction <minimumf>, %10, %cst_13 [1] : vector<32x32xf32> to vector<32xf32>
      %12 = vector.shape_cast %11 : vector<32xf32> to vector<32x1xf32>
      %13 = vector.broadcast %12 : vector<32x1xf32> to vector<32x32xf32>
      %14 = arith.subf %13, %10 : vector<32x32xf32>
      %15 = math.exp %14 : vector<32x32xf32>
      %cst_14 = arith.constant dense<0.000000e+00> : vector<32xf32>
      %16 = vector.multi_reduction <add>, %15, %cst_14 [1] : vector<32x32xf32> to vector<32xf32>
      %17 = vector.shape_cast %16 : vector<32xf32> to vector<32x1xf32>
      %18 = tpu.reciprocal %17 : vector<32x1xf32> -> vector<32x1xf32>
      %19 = vector.broadcast %18 : vector<32x1xf32> to vector<32x32xf32>
      %20 = arith.mulf %15, %19 : vector<32x32xf32>
      %cst_15 = arith.constant dense<0.000000e+00> : vector<32x128xf32>
      %21 = tpu.matmul %20, %9, %cst_15 {dimension_numbers = #tpu.dot_dimension_numbers<[1], [0], [0], [1], [0, 0, 1, 1], [], []>, precision = #tpu.contract_precision<fp32>} : vector<32x32xf32>, vector<32x128xf32>, vector<32x128xf32> -> vector<32x128xf32>
      %22 = vector.broadcast %0 : f32 to vector<32x128xf32>
      %23 = arith.mulf %22, %21 : vector<32x128xf32>
      %24 = arith.addf %23, %9 : vector<32x128xf32>
      %cst_16 = arith.constant dense<0.000000e+00> : vector<32x128xf32>
      %25 = tpu.matmul %2, %9, %cst_16 {dimension_numbers = #tpu.dot_dimension_numbers<[0], [0], [1], [1], [0, 1, 1, 1], [], []>, precision = #tpu.contract_precision<fp32>} : vector<32x32xf32>, vector<32x128xf32>, vector<32x128xf32> -> vector<32x128xf32>
      %26 = vector.broadcast %3 : vector<32x1xf32> to vector<32x128xf32>
      %27 = arith.addf %25, %26 : vector<32x128xf32>
      %cst_17 = arith.constant 0xFF800000 : f32
      %28 = vector.broadcast %cst_17 : f32 to vector<1x128xf32>
      %cst_18 = arith.constant 0.000000e+00 : f32
      %29 = vector.broadcast %cst_18 : f32 to vector<1x128xf32>
      %cst_19 = arith.constant 0.000000e+00 : f32
      %30 = vector.broadcast %cst_19 : f32 to vector<32x128xf32>
      %c0_i32_20 = arith.constant 0 : i32
      %c128_i32 = arith.constant 128 : i32
      %31 = arith.muli %c0_i32_20, %c128_i32 : i32
      %32 = tpu.assume_multiple %31, 128 : i32
      %33 = arith.index_cast %arg8 : i32 to index
      %c0_21 = arith.constant 0 : index
      %34 = arith.index_cast %32 : i32 to index
      %35 = vector.load %arg2[%33, %c0_21, %34] : memref<8x32x128xf32, #tpu.memory_space<vmem>>, vector<1x32x128xf32>
      %36 = vector.shape_cast %35 : vector<1x32x128xf32> to vector<32x128xf32>
      %cst_22 = arith.constant dense<0.000000e+00> : vector<128x128xf32>
      %37 = tpu.matmul %36, %27, %cst_22 {dimension_numbers = #tpu.dot_dimension_numbers<[0], [0], [1], [1], [0, 1, 1, 1], [], []>, precision = #tpu.contract_precision<fp32>} : vector<32x128xf32>, vector<32x128xf32>, vector<128x128xf32> -> vector<128x128xf32>
      %cst_23 = arith.constant dense<0xFF800000> : vector<128xf32>
      %38 = vector.multi_reduction <maximumf>, %37, %cst_23 [0] : vector<128x128xf32> to vector<128xf32>
      %39 = vector.shape_cast %38 : vector<128xf32> to vector<1x128xf32>
      %40 = arith.maximumf %28, %39 : vector<1x128xf32>
      %41 = arith.subf %28, %40 : vector<1x128xf32>
      %42 = math.exp %41 : vector<1x128xf32>
      %43 = vector.broadcast %40 : vector<1x128xf32> to vector<128x128xf32>
      %44 = arith.subf %37, %43 : vector<128x128xf32>
      %45 = math.exp %44 : vector<128x128xf32>
      %46 = arith.mulf %42, %29 : vector<1x128xf32>
      %cst_24 = arith.constant dense<0.000000e+00> : vector<128xf32>
      %47 = vector.multi_reduction <add>, %45, %cst_24 [0] : vector<128x128xf32> to vector<128xf32>
      %48 = vector.shape_cast %47 : vector<128xf32> to vector<1x128xf32>
      %49 = arith.addf %46, %48 : vector<1x128xf32>
      %50 = vector.broadcast %42 : vector<1x128xf32> to vector<32x128xf32>
      %51 = arith.mulf %50, %30 : vector<32x128xf32>
      %cst_25 = arith.constant dense<0.000000e+00> : vector<32x128xf32>
      %52 = tpu.matmul %36, %45, %cst_25 {dimension_numbers = #tpu.dot_dimension_numbers<[1], [0], [0], [1], [0, 0, 1, 1], [], []>, precision = #tpu.contract_precision<fp32>} : vector<32x128xf32>, vector<128x128xf32>, vector<32x128xf32> -> vector<32x128xf32>
      %53 = arith.addf %51, %52 : vector<32x128xf32>
      %c1_i32_26 = arith.constant 1 : i32
      %54 = tpu.reciprocal %49 : vector<1x128xf32> -> vector<1x128xf32>
      %55 = vector.broadcast %54 : vector<1x128xf32> to vector<32x128xf32>
      %56 = arith.mulf %53, %55 : vector<32x128xf32>
      %cst_27 = arith.constant dense<0.000000e+00> : vector<32x128xf32>
      %57 = tpu.matmul %4, %56, %cst_27 {dimension_numbers = #tpu.dot_dimension_numbers<[1], [0], [0], [1], [0, 0, 1, 1], [], []>, precision = #tpu.contract_precision<fp32>} : vector<32x32xf32>, vector<32x128xf32>, vector<32x128xf32> -> vector<32x128xf32>
      %58 = vector.broadcast %5 : vector<32x1xf32> to vector<32x128xf32>
      %59 = arith.addf %57, %58 : vector<32x128xf32>
      %60 = vector.broadcast %1 : f32 to vector<32x128xf32>
      %61 = arith.mulf %60, %59 : vector<32x128xf32>
      %62 = arith.addf %61, %9 : vector<32x128xf32>
      %63 = arith.addf %24, %62 : vector<32x128xf32>
      %cst_28 = arith.constant 5.000000e-01 : f32
      %64 = vector.broadcast %cst_28 : f32 to vector<32x128xf32>
      %65 = arith.mulf %63, %64 : vector<32x128xf32>
      %66 = arith.index_cast %arg8 : i32 to index
      %c0_29 = arith.constant 0 : index
      %c0_30 = arith.constant 0 : index
      %67 = vector.load %arg7[%66, %c0_29, %c0_30] : memref<8x32x128xf32, #tpu.memory_space<vmem>>, vector<1x32x128xf32>
      %68 = vector.shape_cast %67 : vector<1x32x128xf32> to vector<32x128xf32>
      %69 = vector.shape_cast %65 : vector<32x128xf32> to vector<1x32x128xf32>
      tpu.vector_store %arg7[%66, %c0_29, %c0_30], %69 {strides = array<i32>} : memref<8x32x128xf32, #tpu.memory_space<vmem>>, vector<1x32x128xf32>,
    }
    %c8_i32_10 = arith.constant 8 : i32
    return
  }
  func.func @transform_0(%arg0: i32) -> (i32, i32) {
    %c0_i32 = arith.constant 0 : i32
    %c0_i32_0 = arith.constant 0 : i32
    %c0_i32_1 = arith.constant 0 : i32
    return %c0_i32, %c0_i32_0 : i32, i32
  }
  func.func @transform_1(%arg0: i32) -> (i32, i32, i32) {
    %c0_i32 = arith.constant 0 : i32
    %c0_i32_0 = arith.constant 0 : i32
    %c0_i32_1 = arith.constant 0 : i32
    return %arg0, %c0_i32, %c0_i32_0 : i32, i32, i32
  }
  func.func @transform_2(%arg0: i32) -> (i32, i32) {
    %c0_i32 = arith.constant 0 : i32
    %c0_i32_0 = arith.constant 0 : i32
    %c0_i32_1 = arith.constant 0 : i32
    return %c0_i32, %c0_i32_0 : i32, i32
  }
  func.func @transform_3(%arg0: i32) -> (i32, i32) {
    %c0_i32 = arith.constant 0 : i32
    %c0_i32_0 = arith.constant 0 : i32
    %c0_i32_1 = arith.constant 0 : i32
    return %c0_i32, %c0_i32_0 : i32, i32
  }
  func.func @transform_4(%arg0: i32) -> (i32, i32) {
    %c0_i32 = arith.constant 0 : i32
    %c0_i32_0 = arith.constant 0 : i32
    %c0_i32_1 = arith.constant 0 : i32
    return %c0_i32, %c0_i32_0 : i32, i32
  }
  func.func @transform_5(%arg0: i32) -> (i32, i32) {
    %c0_i32 = arith.constant 0 : i32
    %c0_i32_0 = arith.constant 0 : i32
    %c0_i32_1 = arith.constant 0 : i32
    return %c0_i32, %c0_i32_0 : i32, i32
  }
  func.func @transform_6(%arg0: i32) -> (i32, i32, i32) {
    %c0_i32 = arith.constant 0 : i32
    %c0_i32_0 = arith.constant 0 : i32
    %c0_i32_1 = arith.constant 0 : i32
    return %arg0, %c0_i32, %c0_i32_0 : i32, i32, i32
  }
}

</mosaic_0001>

<bundles_post_ra>
// kernel: tpu_custom_call.1
= control target key start
LH: loop header
LB: loop body
LE: loop exit
PB: predicated region body
PF: predicated region fallthrough
CT: control target
= control target key end

     0   :  { %11 = vsyncpa [#allocation5], 0  ;;  %s7935_s0 = inlined_call_operand.vmem [shape: f32[2,1], index: 0, kind: input, shape index: {}]   ;;  %s7936_s1 = inlined_call_operand.hbm [shape: f32[8,32,128], index: 1, kind: input, shape index: {}]   ;;  %s7937_s2 = inlined_call_operand.vmem [shape: f32[32,32], index: 2, kind: input, shape index: {}]   ;;  %s7938_s3 = inlined_call_operand.vmem [shape: f32[32,1], index: 3, kind: input, shape index: {}]   ;;  %s7939_s4 = inlined_call_operand.vmem [shape: f32[32,32], index: 4, kind: input, shape index: {}]   ;;  %s7940_s5 = inlined_call_operand.vmem [shape: f32[32,1], index: 5, kind: input, shape index: {}]   ;;  %s7941_s6 = inlined_call_operand.hbm [shape: f32[8,32,128], index: 6, kind: output, shape index: {}]  }
   0x1   :  { %12 = vsyncpa [#allocation3], 0 }
   0x2   :  { %13 = vsyncpa [#allocation4], 0  ;;  %s20_s23 = sshll.u32 %s7935_s0, 4  ;;  %s21_s23 = int_to_ptr.vmem [resolvable:$true] %s20_s23 }
   0x3   :  { %s6727_s24 = scalar_lea.vmem %s21_s23, 32  ;;  %p6732_p1 = scmp.lt.s32.totalorder %s21_s23, %s21_s23 }
   0x4   :  { %p6728_p0 = scmp.ne.s32.totalorder %s21_s23, %s6727_s24  ;;  %p6733_p2 = scmp.lt.s32.totalorder %s6727_s24, %s6727_s24 }
   0x6   :  { %p6734_p3 = por %p6733_p2, %p6732_p1 }
   0x8   :  { %p6735_p4 = pnand %p6734_p3, %p6728_p0 }
   0xa   :  { %6738 = shalt.err (!%p6735_p4)
}
   0xb   :  { %s6797_s25 = smov [#allocation2]   ;;  %s6798_s26 = smov [#allocation6]  }
   0xc   :  { %23 = dma.vmem_to_smem %s21_s23, 32, %s6797_s25, [#allocation5]  }
   0xd   :  { %s29_s27 = sshll.u32 %s6798_s26, 4  ;;  %s6739_s30 = scalar_lea.hbm %s7936_s1, 4096  ;;  %s30_s27 = int_to_ptr.vmem [resolvable:$true] %s29_s27 }
   0xe   :  { %p6740_p5 = scmp.ne.s32.totalorder %s7936_s1, %s6739_s30  ;;  %p6743_p6 = scmp.lt.u32.totalorder %s6739_s30, %s7936_s1 }
  0x10   :  { %p6745_p7 = pnand %p6743_p6, %p6740_p5 }
  0x12   :  { %6748 = shalt.err (!%p6745_p7)
}
  0x13   :  { %s6749_s10 = scalar_lea.vmem %s30_s27, 4096  ;;  %p6754_p9 = scmp.lt.s32.totalorder %s30_s27, %s30_s27 }
  0x14   :  { %p6750_p8 = scmp.ne.s32.totalorder %s30_s27, %s6749_s10  ;;  %p6755_p10 = scmp.lt.s32.totalorder %s6749_s10, %s6749_s10 }
  0x16   :  { %p6756_p11 = por %p6755_p10, %p6754_p9 }
  0x18   :  { %p6757_p12 = pnand %p6756_p11, %p6750_p8 }
  0x1a   :  { %6760 = shalt.err (!%p6757_p12)
}
  0x1b   :  { %s6799_s11 = smov 128   ;;  %s6800_s12 = smov 8  }
  0x1c   :  { %35 = dma.hbm_to_vmem [thread:$0]  %s7936_s1, 4096, %s30_s27, [#allocation3], %s6799_s11, %s6799_s11, %s6800_s12  }
  0x1d   :  { %6787 = dma.done.wait [#allocation5], 32  }
  0x1e   :  { %6788 = vsyncadd [#allocation5], 4294967264 }
  0x1f   :  { %6789 = dma.done.wait [#allocation3], 4096  }
  0x20   :  { %6790 = vsyncadd [#allocation3], 4294963200 }
  0x21   :  { %50 = sfence }
  0x22   :  { %s6856_s15 = sld [smem:[#allocation2]]  ;;  %v6863_v0 = vld [vmem:[%s7937_s2] sm:$0xff]  ;;  %v6868_v1 = vld [vmem:[%s7937_s2 + $0x8] sm:$0xff]  ;;  %v6873_v2 = vld [vmem:[%s7937_s2 + $0x10] sm:$0xff] }
  0x23   :  { %s6858_s16 = sld [smem:[#allocation2 + $0x80]]  ;;  %7970 = vst [vmem:[#allocation11_spill] sm:$0xff] %v6863_v0  ;;  %7971 = vst [vmem:[#allocation12_spill] sm:$0xff] %v6868_v1  ;;  %v6878_v3 = vld [vmem:[%s7937_s2 + $0x18] sm:$0xff]  ;;  %v6883_v4 = vld [vmem:[%s7938_s3] sm:$0xff] }
  0x24   :  { %7972 = vst [vmem:[#allocation13_spill] sm:$0xff] %v6873_v2  ;;  %7973 = vst [vmem:[#allocation14_spill] sm:$0xff] %v6878_v3  ;;  %v6888_v5 = vld [vmem:[%s7938_s3 + $0x8] sm:$0xff]  ;;  %v6893_v6 = vld [vmem:[%s7938_s3 + $0x10] sm:$0xff] }
  0x25   :  { %7974 = vst [vmem:[#allocation15_spill] sm:$0xff] %v6883_v4  ;;  %7975 = vst [vmem:[#allocation16_spill] sm:$0xff] %v6888_v5  ;;  %v6898_v7 = vld [vmem:[%s7938_s3 + $0x18] sm:$0xff]  ;;  %v6903_v8 = vld [vmem:[%s7939_s4] sm:$0xff] }
  0x26   :  { %7976 = vst [vmem:[#allocation17_spill] sm:$0xff] %v6893_v6  ;;  %7977 = vst [vmem:[#allocation18_spill] sm:$0xff] %v6898_v7  ;;  %v6908_v9 = vld [vmem:[%s7939_s4 + $0x8] sm:$0xff]  ;;  %v6913_v10 = vld [vmem:[%s7939_s4 + $0x10] sm:$0xff] }
  0x27   :  { %7978 = vst [vmem:[#allocation19_spill] sm:$0xff] %v6903_v8  ;;  %7979 = vst [vmem:[#allocation20_spill] sm:$0xff] %v6908_v9  ;;  %v6918_v11 = vld [vmem:[%s7939_s4 + $0x18] sm:$0xff]  ;;  %v6923_v12 = vld [vmem:[%s7940_s5] sm:$0xff]  ;;  %s6940_s4 = smov 0  }
  0x28   :  { %7980 = vst [vmem:[#allocation21_spill] sm:$0xff] %v6913_v10  ;;  %7981 = vst [vmem:[#allocation22_spill] sm:$0xff] %v6918_v11  ;;  %v6928_v13 = vld [vmem:[%s7940_s5 + $0x8] sm:$0xff]  ;;  %v6933_v14 = vld [vmem:[%s7940_s5 + $0x10] sm:$0xff] }
  0x29   :  { %7982 = vst [vmem:[#allocation23_spill] sm:$0xff] %v6923_v12  ;;  %7983 = vst [vmem:[#allocation24_spill] sm:$0xff] %v6928_v13  ;;  %v6938_v15 = vld [vmem:[%s7940_s5 + $0x18] sm:$0xff] }
  0x2a   :  { %7984 = vst [vmem:[#allocation25_spill] sm:$0xff] %v6933_v14  ;;  %7985 = vst [vmem:[#allocation26_spill] sm:$0xff] %v6938_v15 }
  0x2b LB: > { %s4841_s24 = sshll.u32 %s6795_s4, 5  ;;  %vm695_vm0 = vcmask 261120   ;;  %v6801_v56 = vmov 0   ;;  %v7995_v0 = vld [vmem:[#allocation11_spill] sm:$0xff]  ;;  %v7996_v1 = vld [vmem:[#allocation12_spill] sm:$0xff]  ;;  %v7997_v2 = vld [vmem:[#allocation13_spill] sm:$0xff]  ;;  %s6795_s4 = sphi %s6940_s4, %s74_s4  }
  0x2c   : > { %s6948_s25 = scalar_lea.vmem [#allocation6], %s4841_s24  ;;  %6669 = vset.pattern.permute.xlu1 %v6801_v56  ;;  %v7991_v4 = vld [vmem:[#allocation15_spill] sm:$0xff]  ;;  %v7992_v5 = vld [vmem:[#allocation16_spill] sm:$0xff]  ;;  %v7998_v3 = vld [vmem:[#allocation14_spill] sm:$0xff]  ;;  %s4806_s5 = scalar_lea.vmem [#allocation7], %s4841_s24 }
  0x2d   : > { %v6951_v16 = vld [vmem:[%s6948_s25] sm:$0xff]  ;;  %v6954_v17 = vld [vmem:[%s6948_s25 + $0x8] sm:$0xff]  ;;  %v6957_v18 = vld [vmem:[%s6948_s25 + $0x10] sm:$0xff]  ;;  %s74_s4 = sadd.s32 1, %s6795_s4  }
  0x2e   : > { %v6960_v19 = vand.u32 4294901760, %v6951_v16  ;;  %v6963_v20 = vand.u32 4294901760, %v6954_v17  ;;  %v6966_v21 = vld [vmem:[%s6948_s25 + $0x18] sm:$0xff]  ;;  %v6969_v22 = vand.u32 4294901760, %v6957_v18  ;;  %v7993_v6 = vld [vmem:[#allocation17_spill] sm:$0xff]  ;;  %v7994_v7 = vld [vmem:[#allocation18_spill] sm:$0xff] }
  0x2f   : > { %v6972_v23 = vand.u32 4294901760, %v6966_v21  ;;  %p71_p13 = scmp.ge.s32.totalorder %s74_s4, 8  }
  0x30   : > { %v6976_v24 = vpack.c.bf16 %v6963_v20, %v6960_v19  ;;  %v6980_v25 = vsub.f32 %v6951_v16, %v6960_v19  ;;  %v6984_v26 = vsub.f32 %v6954_v17, %v6963_v20  ;;  %v6988_v27 = vsub.f32 %v6957_v18, %v6969_v22  ;;  %v8000_v12 = vld [vmem:[#allocation23_spill] sm:$0xff]  ;;  %v8001_v13 = vld [vmem:[#allocation24_spill] sm:$0xff]  ;;  %s6802_s26 = smov (%p71_p13), [#allocation7]  }
  0x31   : > { %v6992_v28 = vpack.c.bf16 %v6972_v23, %v6969_v22  ;;  %v6996_v29 = vsub.f32 %v6966_v21, %v6972_v23  ;;  %v7999_v14 = vld [vmem:[#allocation25_spill] sm:$0xff]  ;;  %v8002_v15 = vld [vmem:[#allocation26_spill] sm:$0xff]  ;;  %s4816_s27 = sshll.u32 (%p71_p13), %s6802_s26, 4  ;;  %s4817_s27 = int_to_ptr.vmem [resolvable:$true] %s4816_s27 }
  0x32   : > { %6031 = vmatprep.subr.bf16.mxu0 %v6976_v24  ;;  %v7000_v30 = vand.u32 4294901760, %v6980_v25  ;;  %v7003_v31 = vand.u32 4294901760, %v6984_v26  ;;  %6079 = vmatprep.subr.bf16.mxu1 %v6976_v24  ;;  %v7014_v34 = vand.u32 4294901760, %v6988_v27  ;;  %v7053_v44 = vpack.c.bf16 %v6984_v26, %v6980_v25  ;;  %s6761_s28 = scalar_lea.vmem (%p71_p13), %s4817_s27, 4096  ;;  %p6766_p1 = scmp.lt.s32.totalorder (%p71_p13), %s4817_s27, %s4817_s27 }
  0x33   : > { %7986 = vst [vmem:[#allocation27_spill] sm:$0xff] %v6996_v29  ;;  %6033 = vmatpush3.bf16.xpose.msra.mxu0 %v6976_v24  ;;  %6081 = vmatpush3.bf16.msra.mxu1 %v6976_v24  ;;  %v7017_v35 = vand.u32 4294901760, %v6996_v29  ;;  %v7059_v45 = vpack.c.bf16 %v6996_v29, %v6988_v27  ;;  %p6762_p0 = scmp.ne.s32.totalorder (%p71_p13), %s4817_s27, %s6761_s28  ;;  %p6767_p2 = scmp.lt.s32.totalorder (%p71_p13), %s6761_s28, %s6761_s28 }
  0x34   : > { %7987 = vst [vmem:[#allocation28_spill] sm:$0xff] %v7000_v30  ;;  %7988 = vst [vmem:[#allocation29_spill] sm:$0xff] %v7003_v31  ;;  %6035 = vmatprep.subr.bf16.mxu0 %v6992_v28  ;;  %v153_v32 = vsub.f32 %v6980_v25, %v7000_v30  ;;  %v163_v33 = vsub.f32 %v6984_v26, %v7003_v31  ;;  %6083 = vmatprep.subr.bf16.mxu1 %v6992_v28 }
  0x35   : > { %7989 = vst [vmem:[#allocation30_spill] sm:$0xff] %v7014_v34  ;;  %7990 = vst [vmem:[#allocation31_spill] sm:$0xff] %v7017_v35  ;;  %v173_v39 = vsub.f32 %v6988_v27, %v7014_v34  ;;  %v183_v40 = vsub.f32 %v6996_v29, %v7017_v35  ;;  %v7077_v46 = vpack.c.bf16 %v7003_v31, %v7000_v30  ;;  %p6768_p3 = por (%p71_p13), %p6767_p2, %p6766_p1 }
  0x36   : > { %v7020_v36 = vand.u32 4294901760, %v153_v32  ;;  %v7022_v37 = vand.u32 4294901760, %v163_v33  ;;  %v7083_v47 = vpack.c.bf16 %v7017_v35, %v7014_v34 }
  0x37   : > { %6085 = vmatpush3.bf16.msra.mxu1 %v6992_v28  ;;  %v7037_v41 = vand.u32 4294901760, %v173_v39  ;;  %v7039_v42 = vand.u32 4294901760, %v183_v40  ;;  %p6769_p4 = pnand (%p71_p13), %p6768_p3, %p6762_p0 }
  0x38   : > { %5282 = vmatprep.mubr.f32.mxu0 %v7020_v36  ;;  %v7028_v38 = vpack.c.bf16 %v7022_v37, %v7020_v36 }
  0x39   : > { %v7043_v43 = vpack.c.bf16 %v7039_v42, %v7037_v41 }
  0x3a   : > { %6087 = vmatprep.subr.bf16.mxu1 %v7028_v38 }
  0x3b   : > { %6037 = vmatpush3.bf16.xpose.msra.mxu0 %v6992_v28 }
  0x3c   : > { %6039 = vmatprep.subr.bf16.mxu0 %v7028_v38 }
  0x42   : > { %5283 = vmatmul.mubr.f32.vlgmr.msra.gmra.mrb[0].mxu0 %v7022_v37 }
  0x43   : > { %6041 = vmatpush3.bf16.xpose.msra.mxu0 %v7028_v38  ;;  %5285 = vmatprep.mubr.f32.mxu0 %v7037_v41 }
  0x44   : > { %6043 = vmatprep.subr.bf16.mxu0 %v7043_v43 }
  0x46   : > { %5286 = vmatmul.mubr.f32.gmra.mrb[2].mxu0 %v7039_v42 }
  0x47   : > { %5296 = vmatprep.mubr.f32.mxu0 %v6960_v19 }
  0x4b   : > { %6045 = vmatpush3.bf16.xpose.msra.mxu0 %v7043_v43 }
  0x4c   : > { %6047 = vmatprep.subr.bf16.mxu0 %v7053_v44 }
  0x52   : > { %5297 = vmatmul.mubr.f32.vlgmr.msra.gmra.mrb[0].mxu0 %v6963_v20 }
  0x53   : > { %6049 = vmatpush3.bf16.xpose.msra.mxu0 %v7053_v44  ;;  %5299 = vmatprep.mubr.f32.mxu0 %v6969_v22 }
  0x54   : > { %6051 = vmatprep.subr.bf16.mxu0 %v7059_v45 }
  0x56   : > { %5300 = vmatmul.mubr.f32.gmra.mrb[2].mxu0 %v6972_v23 }
  0x57   : > { %5310 = vmatprep.mubr.f32.mxu0 %v6980_v25 }
  0x5b   : > { %6053 = vmatpush3.bf16.xpose.msra.mxu0 %v7059_v45 }
  0x5c   : > { %6055 = vmatprep.subr.bf16.mxu0 %v6976_v24 }
  0x62   : > { %5311 = vmatmul.mubr.f32.vlgmr.msra.gmra.mrb[0].mxu0 %v6984_v26 }
  0x63   : > { %6057 = vmatpush3.bf16.xpose.msra.mxu0 %v6976_v24  ;;  %5313 = vmatprep.mubr.f32.mxu0 %v6988_v27 }
  0x64   : > { %6059 = vmatprep.subr.bf16.mxu0 %v6992_v28 }
  0x66   : > { %5314 = vmatmul.mubr.f32.gmra.mrb[2].mxu0 %v6996_v29 }
  0x67   : > { %5324 = vmatprep.mubr.f32.mxu0 %v7000_v30 }
  0x6b   : > { %6061 = vmatpush3.bf16.xpose.msra.mxu0 %v6992_v28 }
  0x6c   : > { %6063 = vmatprep.subr.bf16.mxu0 %v7077_v46 }
  0x72   : > { %5325 = vmatmul.mubr.f32.vlgmr.msra.gmra.mrb[0].mxu0 %v7003_v31 }
  0x73   : > { %6065 = vmatpush3.bf16.xpose.msra.mxu0 %v7077_v46  ;;  %5327 = vmatprep.mubr.f32.mxu0 %v7014_v34 }
  0x74   : > { %6067 = vmatprep.subr.bf16.mxu0 %v7083_v47 }
  0x76   : > { %5328 = vmatmul.mubr.f32.gmra.mrb[2].mxu0 %v7017_v35 }
  0x77   : > { %5338 = vmatprep.mubr.f32.mxu0 %v6960_v19 }
  0x7b   : > { %6069 = vmatpush3.bf16.xpose.msra.mxu0 %v7083_v47 }
  0x7c   : > { %6071 = vmatprep.subr.bf16.mxu0 %v6976_v24 }
  0x82   : > { %5339 = vmatmul.mubr.f32.vlgmr.msra.gmra.mrb[0].mxu0 %v6963_v20 }
  0x83   : > { %6073 = vmatpush3.bf16.xpose.msra.mxu0 %v6976_v24  ;;  %5341 = vmatprep.mubr.f32.mxu0 %v6969_v22 }
  0x84   : > { %6075 = vmatprep.subr.bf16.mxu0 %v6992_v28 }
  0x86   : > { %5342 = vmatmul.mubr.f32.gmra.mrb[2].mxu0 %v6972_v23 }
  0x87   : > { %5352 = vmatprep.mubr.f32.mxu0 %v6960_v19 }
  0x8b   : > { %6077 = vmatpush3.bf16.xpose.msra.mxu0 %v6992_v28 }
  0x92   : > { %5353 = vmatmul.mubr.f32.vlgmr.msra.gmra.mrb[0].mxu0 %v6963_v20 }
  0x93   : > { %5355 = vmatprep.mubr.f32.mxu0 %v6969_v22 }
  0x96   : > { %5356 = vmatmul.mubr.f32.gmra.mrb[2].mxu0 %v6972_v23 }
 0x165   : > { %v5354_v48 = vpop.f32.mrb[0].mxu0 }
 0x166   : > { %v673_v49 = vpop.f32.mrb[1].mxu0  ;;  %v699_v53 = vsel %vm695_vm0, %v5354_v48, inf }
 0x167   : > { %v696_v50 = vsel %vm695_vm0, %v673_v49, inf }
 0x168   : > { %697 = vmin.xlane.f32.xlu0 %v696_v50 }
 0x169   : > { %v5357_v51 = vpop.f32.mrb[2].mxu0 }
 0x16a   : > { %v685_v52 = vpop.f32.mrb[3].mxu0  ;;  %v705_v55 = vsel %vm695_vm0, %v5357_v51, inf }
 0x16b   : > { %v702_v54 = vsel %vm695_vm0, %v685_v52, inf }
 0x16c   : > { %700 = vmin.xlane.f32.xlu0 %v699_v53  ;;  %703 = vmin.xlane.f32.xlu1 %v702_v54 }
 0x170   : > { %706 = vmin.xlane.f32.xlu1 %v705_v55 }
 0x1f5   : > { %v698_v57 = vpop.xlane.xlu0 %697 }
 0x1f6   : > { %v708_v58 = vsub.f32 %v698_v57, %v673_v49 }
 0x1f8   : > { %v712_v59 = vmul.f32 1.442695, %v708_v58 }
 0x1f9   : > { %v701_v60 = vpop.xlane.xlu0 %700  ;;  %v704_v61 = vpop.xlane.xlu1 %703 }
 0x1fa   : > { %6671 = vpow2.f32 %v712_v59  ;;  %v709_v62 = vsub.f32 %v701_v60, %v5354_v48  ;;  %v710_v63 = vsub.f32 %v704_v61, %v685_v52 }
 0x1fc   : > { %v714_v32 = vmul.f32 1.442695, %v709_v62  ;;  %v716_v33 = vmul.f32 1.442695, %v710_v63 }
 0x1fd   : > { %v707_v39 = vpop.xlane.xlu1 %706 }
 0x1fe   : > { %6673 = vpow2.f32 %v714_v32  ;;  %v711_v40 = vsub.f32 %v707_v39, %v5357_v51 }
 0x1ff   : > { %6675 = vpow2.f32 %v716_v33 }
 0x200   : > { %v718_v50 = vmul.f32 1.442695, %v711_v40 }
 0x202   : > { %6677 = vpow2.f32 %v718_v50 }
 0x204   : > { %v6672_v53 = vpop.eup %6671 }
 0x205   : > { %v720_v54 = vsel %vm695_vm0, %v6672_v53, 0.0 }
 0x206   : > { %721 = vadd.xlane.f32.xlu0 %v720_v54 }
 0x208   : > { %v6674_v55 = vpop.eup %6673 }
 0x209   : > { %v6676_v49 = vpop.eup %6675  ;;  %v723_v57 = vsel %vm695_vm0, %v6674_v55, 0.0 }
 0x20a   : > { %724 = vadd.xlane.f32.xlu1 %v723_v57  ;;  %v726_v48 = vsel %vm695_vm0, %v6676_v49, 0.0 }
 0x20b   : > { %727 = vadd.xlane.f32.xlu0 %v726_v48 }
 0x20c   : > { %v6678_v52 = vpop.eup %6677 }
 0x20d   : > { %v729_v58 = vsel %vm695_vm0, %v6678_v52, 0.0 }
 0x20e   : > { %730 = vadd.xlane.f32.xlu1 %v729_v58 }
 0x21f   : > { %1377 = vperm.xlu1 %6669, %v7991_v4  }
 0x223   : > { %1382 = vperm.xlu1 %6669, %v7992_v5  }
 0x227   : > { %1387 = vperm.xlu1 %6669, %v7993_v6  }
 0x22b   : > { %1392 = vperm.xlu1 %6669, %v7994_v7  }
 0x238   : > { %1395 = vxpose.xlu0.b32.start [1/4] (short) (narrow) %v7995_v0, 32 }
 0x23c   : > { %1396 = vxpose.xlu0.b32.cont [2/4] (short) (narrow) %v7996_v1, 32 }
 0x240   : > { %1397 = vxpose.xlu0.b32.cont [3/4] (short) (narrow) %v7997_v2, 32 }
 0x244   : > { %1398 = vxpose.xlu0.b32.end [4/4] (short) (narrow) %v7998_v3, 32 }
 0x254   : > { %2059 = vxpose.xlu1.b32.start [1/4] (short) %v6951_v16, 128 }
 0x258   : > { %2060 = vxpose.xlu1.b32.cont [2/4] (short) %v6954_v17, 128 }
 0x25c   : > { %2061 = vxpose.xlu1.b32.cont [3/4] (short) %v6957_v18, 128 }
 0x260   : > { %2062 = vxpose.xlu1.b32.end [4/4] (short) %v6966_v21, 128 }
 0x26d   : > { %6670 = vset.pattern.permute.xlu0 %v6801_v56 }
 0x26e   : > { %4155 = vperm.xlu0 %6670, %v7999_v14  }
 0x272   : > { %4145 = vperm.xlu0 %6670, %v8000_v12  }
 0x276   : > { %4150 = vperm.xlu0 %6670, %v8001_v13  }
 0x293   : > { %v722_v51 = vpop.xlane.xlu0 %721 }
 0x294   : > { %6679 = vrcp.f32 %v722_v51 }
 0x297   : > { %v725_v59 = vpop.xlane.xlu1 %724 }
 0x298   : > { %v728_v60 = vpop.xlane.xlu0 %727  ;;  %6681 = vrcp.f32 %v725_v59 }
 0x299   : > { %6683 = vrcp.f32 %v728_v60 }
 0x29b   : > { %v731_v16 = vpop.xlane.xlu1 %730 }
 0x29c   : > { %6685 = vrcp.f32 %v731_v16 }
 0x29e   : > { %v6680_v17 = vpop.eup %6679 }
 0x29f   : > { %v736_v61 = vmul.f32 %v6680_v17, %v6672_v53 }
 0x2a1   : > { %v741_v18 = vsel %vm695_vm0, %v736_v61, 0 }
 0x2a2   : > { %v6682_v21 = vpop.eup %6681  ;;  %v7127_v56 = vand.u32 4294901760, %v741_v18 }
 0x2a3   : > { %v6684_v62 = vpop.eup %6683  ;;  %v737_v63 = vmul.f32 %v6682_v21, %v6674_v55 }
 0x2a4   : > { %v738_v32 = vmul.f32 %v6684_v62, %v6676_v49  ;;  %v822_v33 = vsub.f32 %v741_v18, %v7127_v56 }
 0x2a5   : > { %v744_v39 = vsel %vm695_vm0, %v737_v63, 0 }
 0x2a6   : > { %v6686_v40 = vpop.eup %6685  ;;  %v823_v50 = vand.u32 4294901760, %v822_v33  ;;  %v7131_v54 = vand.u32 4294901760, %v744_v39  ;;  %v747_v57 = vsel %vm695_vm0, %v738_v32, 0 }
 0x2a7   : > { %v739_v48 = vmul.f32 %v6686_v40, %v6678_v52  ;;  %v7134_v53 = vand.u32 4294901760, %v747_v57 }
 0x2a8   : > { %v824_v58 = vsub.f32 %v822_v33, %v823_v50  ;;  %v832_v51 = vsub.f32 %v744_v39, %v7131_v54 }
 0x2a9   : > { %v842_v59 = vsub.f32 %v747_v57, %v7134_v53  ;;  %v750_v55 = vsel %vm695_vm0, %v739_v48, 0  ;;  %v7153_v57 = vpop.permute.xlu1 %1377 }
 0x2aa   : > { %v825_v49 = vand.u32 4294901760, %v824_v58  ;;  %v833_v60 = vand.u32 4294901760, %v832_v51  ;;  %v7139_v16 = vand.u32 4294901760, %v750_v55 }
 0x2ab   : > { %v843_v17 = vand.u32 4294901760, %v842_v59 }
 0x2ac   : > { %5366 = vmatprep.mubr.f32.mxu1 %v825_v49  ;;  %v834_v61 = vsub.f32 %v832_v51, %v833_v60  ;;  %v852_v18 = vsub.f32 %v750_v55, %v7139_v16 }
 0x2ad   : > { %v844_v21 = vsub.f32 %v842_v59, %v843_v17  ;;  %v7159_v58 = vpop.permute.xlu1 %1382 }
 0x2ae   : > { %v835_v52 = vand.u32 4294901760, %v834_v61  ;;  %v853_v62 = vand.u32 4294901760, %v852_v18  ;;  %4160 = vperm.xlu1 %6669, %v8002_v15  }
 0x2af   : > { %v845_v63 = vand.u32 4294901760, %v844_v21 }
 0x2b0   : > { %5367 = vmatmul.mubr.f32.vlgmr.msra.gmra.mrb[0].mxu1 %v835_v52  ;;  %v854_v32 = vsub.f32 %v852_v18, %v853_v62 }
 0x2b1   : > { %5369 = vmatprep.mubr.f32.mxu1 %v845_v63  ;;  %6089 = vmatpush3.bf16.msra.mxu1 %v7028_v38  ;;  %v7164_v49 = vpop.permute.xlu1 %1387 }
 0x2b2   : > { %v855_v39 = vand.u32 4294901760, %v854_v32  ;;  %6091 = vmatprep.subr.bf16.mxu1 %v7043_v43 }
 0x2b4   : > { %5370 = vmatmul.mubr.f32.gmra.mrb[2].mxu1 %v855_v39 }
 0x2b5   : > { %6093 = vmatpush3.bf16.msra.mxu1 %v7043_v43  ;;  %5380 = vmatprep.mubr.f32.mxu1 %v7127_v56 }
 0x2b6   : > { %6095 = vmatprep.subr.bf16.mxu1 %v7053_v44 }
 0x2b8   : > { %5381 = vmatmul.mubr.f32.vlgmr.msra.gmra.mrb[0].mxu1 %v7131_v54  ;;  %v1411_v40 = vpop.trf.xlu0 }
 0x2b9   : > { %5383 = vmatprep.mubr.f32.mxu1 %v7134_v53  ;;  %6097 = vmatpush3.bf16.msra.mxu1 %v7053_v44 }
 0x2ba   : > { %6099 = vmatprep.subr.bf16.mxu1 %v7059_v45 }
 0x2bc   : > { %5384 = vmatmul.mubr.f32.gmra.mrb[2].mxu1 %v7139_v16  ;;  %v1412_v48 = vpop.trf.xlu0 }
 0x2bd   : > { %6101 = vmatpush3.bf16.msra.mxu1 %v7059_v45  ;;  %5394 = vmatprep.mubr.f32.mxu1 %v822_v33  ;;  %v1428_v33 = vsel %vm695_vm0, %v1411_v40, 0 }
 0x2be   : > { %6103 = vmatprep.subr.bf16.mxu1 %v6976_v24 }
 0x2c0   : > { %5395 = vmatmul.mubr.f32.vlgmr.msra.gmra.mrb[0].mxu1 %v832_v51  ;;  %v1413_v55 = vpop.trf.xlu0  ;;  %v7168_v51 = vand.u32 4294901760, %v1428_v33 }
 0x2c1   : > { %5397 = vmatprep.mubr.f32.mxu1 %v842_v59  ;;  %6105 = vmatpush3.bf16.msra.mxu1 %v6976_v24  ;;  %v1431_v59 = vsel %vm695_vm0, %v1412_v48, 0 }
 0x2c2   : > { %6107 = vmatprep.subr.bf16.mxu1 %v6992_v28 }
 0x2c4   : > { %5398 = vmatmul.mubr.f32.gmra.mrb[2].mxu1 %v852_v18  ;;  %v1414_v61 = vpop.trf.xlu0  ;;  %v1509_v18 = vsub.f32 %v1428_v33, %v7168_v51 }
 0x2c5   : > { %6109 = vmatpush3.bf16.msra.mxu1 %v6992_v28  ;;  %5408 = vmatprep.mubr.f32.mxu1 %v823_v50  ;;  %v1434_v50 = vsel %vm695_vm0, %v1413_v55, 0  ;;  %v1437_v52 = vsel %vm695_vm0, %v1414_v61, 0 }
 0x2c6   : > { %6111 = vmatprep.subr.bf16.mxu1 %v7077_v46  ;;  %v7180_v21 = vand.u32 4294901760, %v1434_v50  ;;  %v7187_v63 = vand.u32 4294901760, %v1437_v52  ;;  %v1510_v32 = vand.u32 4294901760, %v1509_v18 }
 0x2c8   : > { %5409 = vmatmul.mubr.f32.vlgmr.msra.gmra.mrb[0].mxu1 %v833_v60  ;;  %v7174_v60 = vand.u32 4294901760, %v1431_v59  ;;  %v1529_v39 = vsub.f32 %v1434_v50, %v7180_v21  ;;  %v1539_v33 = vsub.f32 %v1437_v52, %v7187_v63  ;;  %v1511_v50 = vsub.f32 %v1509_v18, %v1510_v32 }
 0x2c9   : > { %5411 = vmatprep.mubr.f32.mxu1 %v843_v17  ;;  %6113 = vmatpush3.bf16.msra.mxu1 %v7077_v46  ;;  %v7177_v17 = vpop.permute.xlu1 %1392 }
 0x2ca   : > { %6115 = vmatprep.subr.bf16.mxu1 %v7083_v47  ;;  %v1530_v61 = vand.u32 4294901760, %v1529_v39  ;;  %v1512_v52 = vand.u32 4294901760, %v1511_v50 }
 0x2cc   : > { %5412 = vmatmul.mubr.f32.gmra.mrb[2].mxu1 %v853_v62  ;;  %v1519_v62 = vsub.f32 %v1431_v59, %v7174_v60  ;;  %v1531_v0 = vsub.f32 %v1529_v39, %v1530_v61 }
 0x2cd   : > { %6117 = vmatpush3.bf16.msra.mxu1 %v7083_v47  ;;  %5422 = vmatprep.mubr.f32.mxu1 %v7127_v56 }
 0x2ce   : > { %6119 = vmatprep.subr.bf16.mxu1 %v6976_v24  ;;  %v1520_v55 = vand.u32 4294901760, %v1519_v62  ;;  %v1532_v2 = vand.u32 4294901760, %v1531_v0 }
 0x2d0   : > { %5423 = vmatmul.mubr.f32.vlgmr.msra.gmra.mrb[0].mxu1 %v7131_v54 }
 0x2d1   : > { %5425 = vmatprep.mubr.f32.mxu1 %v7134_v53  ;;  %6121 = vmatpush3.bf16.msra.mxu1 %v6976_v24 }
 0x2d2   : > { %6123 = vmatprep.subr.bf16.mxu1 %v6992_v28 }
 0x2d4   : > { %5426 = vmatmul.mubr.f32.gmra.mrb[2].mxu1 %v7139_v16  ;;  %v2075_v40 = vpop.trf.xlu1 }
 0x2d5   : > { %6125 = vmatpush3.bf16.msra.mxu1 %v6992_v28  ;;  %5436 = vmatprep.mubr.f32.mxu1 %v7127_v56  ;;  %v7195_v48 = vsel %vm695_vm0, %v2075_v40, 0  ;;  %v1521_v56 = vsub.f32 %v1519_v62, %v1520_v55  ;;  %v1540_v40 = vand.u32 4294901760, %v1539_v33 }
 0x2d6   : > { %6127 = vmatprep.subr.bf16.mxu1 %v6976_v24  ;;  %v7200_v59 = vand.u32 4294901760, %v7195_v48 }
 0x2d7   : > { %v1522_v1 = vand.u32 4294901760, %v1521_v56 }
 0x2d8   : > { %5437 = vmatmul.mubr.f32.vlgmr.msra.gmra.mrb[0].mxu1 %v7131_v54  ;;  %5566 = vmatprep.mubr.f32.mxu0 %v7200_v59  ;;  %v1541_v54 = vsub.f32 %v1539_v33, %v1540_v40  ;;  %v7243_v0 = vsub.f32 %v7195_v48, %v7200_v59 }
 0x2d9   : > { %5439 = vmatprep.mubr.f32.mxu1 %v7134_v53  ;;  %6129 = vmatpush3.bf16.msra.mxu1 %v6976_v24 }
 0x2da   : > { %6131 = vmatprep.subr.bf16.mxu1 %v6992_v28  ;;  %v1542_v53 = vand.u32 4294901760, %v1541_v54 }
 0x2dc   : > { %5440 = vmatmul.mubr.f32.gmra.mrb[2].mxu1 %v7139_v16 }
 0x2dd   : > { %6133 = vmatpush3.bf16.msra.mxu1 %v6992_v28  ;;  %5450 = vmatprep.mubr.f32.mxu1 %v1512_v52 }
 0x2de   : > { %6135 = vmatprep.subr.bf16.mxu1 %v7028_v38 }
 0x2e0   : > { %5451 = vmatmul.mubr.f32.vlgmr.msra.gmra.mrb[4].mxu1 %v1522_v1  ;;  %v7942_v1 = vand.u32 4294901760, %v7243_v0 }
 0x2e1   : > { %5453 = vmatprep.mubr.f32.mxu1 %v1532_v2  ;;  %6137 = vmatpush3.bf16.msra.mxu1 %v7028_v38 }
 0x2e2   : > { %6139 = vmatprep.subr.bf16.mxu1 %v7043_v43  ;;  %v2211_v2 = vsub.f32 %v7243_v0, %v7942_v1 }
 0x2e4   : > { %5454 = vmatmul.mubr.f32.gmra.mrb[6].mxu1 %v1542_v53 }
 0x2e5   : > { %6141 = vmatpush3.bf16.msra.mxu1 %v7043_v43  ;;  %5464 = vmatprep.mubr.f32.mxu1 %v7168_v51 }
 0x2e6   : > { %6143 = vmatprep.subr.bf16.mxu1 %v7053_v44 }
 0x2e8   : > { %5465 = vmatmul.mubr.f32.vlgmr.msra.gmra.mrb[4].mxu1 %v7174_v60 }
 0x2e9   : > { %5467 = vmatprep.mubr.f32.mxu1 %v7180_v21  ;;  %6145 = vmatpush3.bf16.msra.mxu1 %v7053_v44 }
 0x2ea   : > { %6147 = vmatprep.subr.bf16.mxu1 %v7059_v45 }
 0x2ec   : > { %5468 = vmatmul.mubr.f32.gmra.mrb[6].mxu1 %v7187_v63 }
 0x2ed   : > { %6149 = vmatpush3.bf16.msra.mxu1 %v7059_v45  ;;  %5478 = vmatprep.mubr.f32.mxu1 %v1509_v18 }
 0x2ee   : > { %6151 = vmatprep.subr.bf16.mxu1 %v6976_v24 }
 0x2f0   : > { %5479 = vmatmul.mubr.f32.vlgmr.msra.gmra.mrb[4].mxu1 %v1519_v62 }
 0x2f1   : > { %5481 = vmatprep.mubr.f32.mxu1 %v1529_v39  ;;  %6153 = vmatpush3.bf16.msra.mxu1 %v6976_v24 }
 0x2f2   : > { %6155 = vmatprep.subr.bf16.mxu1 %v6992_v28 }
 0x2f4   : > { %5482 = vmatmul.mubr.f32.gmra.mrb[6].mxu1 %v1539_v33 }
 0x2f5   : > { %6157 = vmatpush3.bf16.msra.mxu1 %v6992_v28  ;;  %5492 = vmatprep.mubr.f32.mxu1 %v1510_v32 }
 0x2f6   : > { %6159 = vmatprep.subr.bf16.mxu1 %v7077_v46 }
 0x2f8   : > { %5493 = vmatmul.mubr.f32.vlgmr.msra.gmra.mrb[4].mxu1 %v1520_v55 }
 0x2f9   : > { %5495 = vmatprep.mubr.f32.mxu1 %v1530_v61  ;;  %6161 = vmatpush3.bf16.msra.mxu1 %v7077_v46 }
 0x2fa   : > { %6163 = vmatprep.subr.bf16.mxu1 %v7083_v47 }
 0x2fc   : > { %5496 = vmatmul.mubr.f32.gmra.mrb[6].mxu1 %v1540_v40 }
 0x2fd   : > { %6165 = vmatpush3.bf16.msra.mxu1 %v7083_v47  ;;  %5506 = vmatprep.mubr.f32.mxu1 %v7168_v51 }
 0x2fe   : > { %6167 = vmatprep.subr.bf16.mxu1 %v6976_v24 }
 0x300   : > { %5507 = vmatmul.mubr.f32.vlgmr.msra.gmra.mrb[4].mxu1 %v7174_v60 }
 0x301   : > { %5509 = vmatprep.mubr.f32.mxu1 %v7180_v21  ;;  %6169 = vmatpush3.bf16.msra.mxu1 %v6976_v24  ;;  %v2212_v24 = vand.u32 4294901760, %v2211_v2 }
 0x302   : > { %6171 = vmatprep.subr.bf16.mxu1 %v6992_v28 }
 0x304   : > { %5510 = vmatmul.mubr.f32.gmra.mrb[6].mxu1 %v7187_v63 }
 0x305   : > { %6173 = vmatpush3.bf16.msra.mxu1 %v6992_v28  ;;  %5520 = vmatprep.mubr.f32.mxu1 %v7168_v51  ;;  %v2076_v28 = vpop.trf.xlu1 }
 0x306   : > { %v2095_v62 = vsel %vm695_vm0, %v2076_v28, 0 }
 0x307   : > { %v7258_v32 = vand.u32 4294901760, %v2095_v62 }
 0x308   : > { %5521 = vmatmul.mubr.f32.vlgmr.msra.gmra.mrb[4].mxu1 %v7174_v60 }
 0x309   : > { %5523 = vmatprep.mubr.f32.mxu1 %v7180_v21  ;;  %v2077_v38 = vpop.trf.xlu1  ;;  %v7261_v48 = vsub.f32 %v2095_v62, %v7258_v32 }
 0x30a   : > { %v2098_v55 = vsel %vm695_vm0, %v2077_v38, 0 }
 0x30b   : > { %v7943_v56 = vand.u32 4294901760, %v7261_v48  ;;  %v7268_v40 = vand.u32 4294901760, %v2098_v55 }
 0x30c   : > { %5524 = vmatmul.mubr.f32.gmra.mrb[6].mxu1 %v7187_v63 }
 0x30d   : > { %5534 = vmatprep.mubr.f32.mxu1 %v2212_v24  ;;  %v2078_v43 = vpop.trf.xlu1  ;;  %v7279_v24 = vsub.f32 %v7261_v48, %v7943_v56  ;;  %v7282_v28 = vsub.f32 %v2098_v55, %v7268_v40 }
 0x30e   : > { %v2101_v33 = vsel %vm695_vm0, %v2078_v43, 0 }
 0x30f   : > { %v7270_v52 = vand.u32 4294901760, %v2101_v33  ;;  %v8007_v11 = vand.u32 4294901760, %v7282_v28 }
 0x311   : > { %v2079_v46 = vpop.trf.xlu1  ;;  %v7285_v38 = vsub.f32 %v2101_v33, %v7270_v52  ;;  %v2231_v9 = vsub.f32 %v7282_v28, %v8007_v11 }
 0x312   : > { %v2104_v61 = vsel %vm695_vm0, %v2079_v46, 0 }
 0x313   : > { %v7272_v53 = vand.u32 4294901760, %v2104_v61 }
 0x315   : > { %v2080_v51 = vpop.trf.xlu1  ;;  %v7290_v62 = vsub.f32 %v2104_v61, %v7272_v53 }
 0x316   : > { %v2107_v50 = vsel %vm695_vm0, %v2080_v51, 0 }
 0x317   : > { %v7274_v2 = vand.u32 4294901760, %v2107_v50 }
 0x319   : > { %v2081_v60 = vpop.trf.xlu1  ;;  %v7293_v1 = vsub.f32 %v2107_v50, %v7274_v2 }
 0x31a   : > { %v2110_v43 = vsel %vm695_vm0, %v2081_v60, 0 }
 0x31b   : > { %v7297_v5 = vand.u32 4294901760, %v2110_v43 }
 0x31d   : > { %v2082_v18 = vpop.trf.xlu1  ;;  %v7312_v6 = vsub.f32 %v2110_v43, %v7297_v5 }
 0x31e   : > { %v2113_v46 = vsel %vm695_vm0, %v2082_v18, 0  ;;  %v2222_v18 = vand.u32 4294901760, %v7279_v24 }
 0x31f   : > { %v7299_v33 = vand.u32 4294901760, %v2113_v46  ;;  %v7947_v35 = vand.u32 4294901760, %v7312_v6 }
 0x321   : > { %v2083_v21 = vpop.trf.xlu1  ;;  %v7315_v61 = vsub.f32 %v2113_v46, %v7299_v33 }
 0x322   : > { %v2116_v13 = vsel %vm695_vm0, %v2083_v21, 0 }
 0x325   : > { %v2084_v63 = vpop.trf.xlu1 }
 0x329   : > { %v2085_v39 = vpop.trf.xlu1 }
 0x32d   : > { %v2086_v54 = vpop.trf.xlu1 }
 0x331   : > { %v2087_v4 = vpop.trf.xlu1 }
 0x3ab   : > { %v7249_v44 = vpop.f32.mrb[0].mxu1 }
 0x3ac   : > { %8003 = vst [vmem:[#allocation32_spill] sm:$0xff] %v7249_v44  ;;  %v7251_v45 = vpop.f32.mrb[1].mxu1 }
 0x3ad   : > { %8004 = vst [vmem:[#allocation33_spill] sm:$0xff] %v7251_v45 }
 0x3af   : > { %v7253_v47 = vpop.f32.mrb[2].mxu1 }
 0x3b0   : > { %8005 = vst [vmem:[#allocation34_spill] sm:$0xff] %v7253_v47  ;;  %v7255_v16 = vpop.f32.mrb[3].mxu1 }
 0x3b1   : > { %8006 = vst [vmem:[#allocation35_spill] sm:$0xff] %v7255_v16 }
 0x3db   : > { %v5522_v51 = vpop.f32.mrb[4].mxu1 }
 0x3dc   : > { %v6466_v56 = vadd.f32 %v5522_v51, %v7159_v58  ;;  %v2031_v3 = vpop.f32.mrb[5].mxu1  ;;  %v2088_v58 = vpop.trf.xlu1 }
 0x3dd   : > { %v6467_v55 = vadd.f32 %v2031_v3, %v7153_v57 }
 0x3de   : > { %v2143_v60 = vand.u32 4294901760, %v6466_v56 }
 0x3df   : > { %v2140_v7 = vand.u32 4294901760, %v6467_v55  ;;  %v5525_v50 = vpop.f32.mrb[6].mxu1 }
 0x3e0   : > { %v2377_v51 = vsub.f32 %v6466_v56, %v2143_v60  ;;  %v6468_v3 = vadd.f32 %v5525_v50, %v7177_v17  ;;  %v2043_v57 = vpop.f32.mrb[7].mxu1  ;;  %v2119_v56 = vsel %vm695_vm0, %v2084_v63, 0 }
 0x3e1   : > { %v7308_v14 = vpack.c.bf16 %v2143_v60, %v2140_v7  ;;  %v2370_v15 = vsub.f32 %v6467_v55, %v2140_v7  ;;  %v6469_v24 = vadd.f32 %v2043_v57, %v7164_v49  ;;  %v7321_v7 = vand.u32 4294901760, %v2116_v13 }
 0x3e2   : > { %v2378_v12 = vand.u32 4294901760, %v2377_v51  ;;  %v2149_v45 = vand.u32 4294901760, %v6468_v3  ;;  %v2122_v49 = vsel %vm695_vm0, %v2085_v39, 0  ;;  %v7329_v44 = vand.u32 4294901760, %v2119_v56 }
 0x3e3   : > { %v2371_v17 = vand.u32 4294901760, %v2370_v15  ;;  %v2146_v50 = vand.u32 4294901760, %v6469_v24  ;;  %6175 = vmatprep.subr.bf16.mxu1 %v7308_v14  ;;  %v7319_v21 = vpack.c.bf16 %v2377_v51, %v2370_v15  ;;  %v7334_v10 = vand.u32 4294901760, %v2122_v49 }
 0x3e4   : > { %v2391_v43 = vsub.f32 %v6468_v3, %v2149_v45  ;;  %6177 = vmatpush3.bf16.msra.mxu1 %v7308_v14  ;;  %v2379_v46 = vsub.f32 %v2377_v51, %v2378_v12  ;;  %v2128_v3 = vsel %vm695_vm0, %v2087_v4, 0  ;;  %v7355_v31 = vsub.f32 %v2119_v56, %v7329_v44 }
 0x3e5   : > { %v7325_v55 = vpack.c.bf16 %v2149_v45, %v2146_v50  ;;  %v2384_v60 = vsub.f32 %v6469_v24, %v2146_v50  ;;  %v2372_v57 = vsub.f32 %v2370_v15, %v2371_v17  ;;  %v7327_v63 = vpack.c.bf16 %v2378_v12, %v2371_v17  ;;  %v2089_v17 = vpop.trf.xlu1 }
 0x3e6   : > { %v2392_v16 = vand.u32 4294901760, %v2391_v43  ;;  %v2380_v47 = vand.u32 4294901760, %v2379_v46  ;;  %v7340_v15 = vsub.f32 %v2116_v13, %v7321_v7  ;;  %v2125_v12 = vsel %vm695_vm0, %v2086_v54, 0 }
 0x3e7   : > { %v2385_v39 = vand.u32 4294901760, %v2384_v60  ;;  %6179 = vmatprep.subr.bf16.mxu1 %v7325_v55  ;;  %v2373_v51 = vand.u32 4294901760, %v2372_v57  ;;  %v7337_v45 = vpack.c.bf16 %v2391_v43, %v2384_v60  ;;  %v8008_v50 = vand.u32 4294901760, %v7285_v38 }
 0x3e8   : > { %6181 = vmatpush3.bf16.msra.mxu1 %v7325_v55  ;;  %v2393_v24 = vsub.f32 %v2391_v43, %v2392_v16  ;;  %v2232_v13 = vand.u32 4294901760, %v2231_v9  ;;  %v8009_v54 = vand.u32 4294901760, %v7290_v62  ;;  %v7360_v43 = vand.u32 4294901760, %v2125_v12 }
 0x3e9   : > { %v6182_v11 = vpack.c.bf16 %v2380_v47, %v2373_v51  ;;  %v2241_v46 = vsub.f32 %v7285_v38, %v8008_v50  ;;  %v2386_v8 = vsub.f32 %v2384_v60, %v2385_v39  ;;  %v7348_v57 = vpack.c.bf16 %v2392_v16, %v2385_v39 }
 0x3ea   : > { %v2394_v34 = vand.u32 4294901760, %v2393_v24  ;;  %v2251_v4 = vsub.f32 %v7290_v62, %v8009_v54  ;;  %v7358_v47 = vsub.f32 %v2122_v49, %v7334_v10  ;;  %v7364_v39 = vand.u32 4294901760, %v2128_v3 }
 0x3eb   : > { %5535 = vmatmul.mubr.f32.vlgmr.msra.gmra.mrb[8].mxu1 %v2222_v18  ;;  %6183 = vmatprep.subr.bf16.mxu0 %v6182_v11  ;;  %v2387_v16 = vand.u32 4294901760, %v2386_v8  ;;  %v2131_v51 = vsel %vm695_vm0, %v2088_v58, 0  ;;  %v2134_v56 = vsel %vm695_vm0, %v2089_v17, 0  ;;  %v2242_v24 = vand.u32 4294901760, %v2241_v46  ;;  %v2090_v17 = vpop.trf.xlu1 }
 0x3ec   : > { %5537 = vmatprep.mubr.f32.mxu1 %v2232_v13  ;;  %6185 = vmatpush3.bf16.msra.mxu0 %v6182_v11  ;;  %v8010_v50 = vand.u32 4294901760, %v7293_v1  ;;  %v2252_v54 = vand.u32 4294901760, %v2251_v4  ;;  %v2271_v8 = vsub.f32 %v7312_v6, %v7947_v35  ;;  %v7948_v60 = vand.u32 4294901760, %v7355_v31 }
 0x3ed   : > { %v6186_v49 = vpack.c.bf16 %v2394_v34, %v2387_v16  ;;  %v7377_v58 = vsub.f32 %v2125_v12, %v7360_v43  ;;  %v7379_v11 = vand.u32 4294901760, %v2131_v51  ;;  %v7382_v34 = vsub.f32 %v2128_v3, %v7364_v39 }
 0x3ee   : > { %v2261_v18 = vsub.f32 %v7293_v1, %v8010_v50  ;;  %v7384_v46 = vand.u32 4294901760, %v2134_v56  ;;  %v2137_v13 = vsel %vm695_vm0, %v2090_v17, 0  ;;  %v8011_v4 = vand.u32 4294901760, %v7340_v15 }
 0x3ef   : > { %5538 = vmatmul.mubr.f32.gmra.mrb[10].mxu1 %v2242_v24  ;;  %6187 = vmatprep.subr.bf16.mxu0 %v6186_v49  ;;  %v8012_v50 = vand.u32 4294901760, %v7315_v61  ;;  %v2272_v35 = vand.u32 4294901760, %v2271_v8  ;;  %v2320_v3 = vand.u32 4294901760, %v7377_v58  ;;  %v7396_v9 = vsub.f32 %v2131_v51, %v7379_v11 }
 0x3f0   : > { %5540 = vmatprep.mubr.f32.mxu1 %v2252_v54  ;;  %6189 = vmatpush3.bf16.msra.mxu0 %v6186_v49  ;;  %v2291_v16 = vsub.f32 %v7340_v15, %v8011_v4  ;;  %v2262_v12 = vand.u32 4294901760, %v2261_v18  ;;  %v7398_v17 = vand.u32 4294901760, %v2137_v13  ;;  %v2301_v49 = vsub.f32 %v7355_v31, %v7948_v60 }
 0x3f1   : > { %6191 = vmatprep.subr.bf16.mxu0 %v7319_v21  ;;  %v2281_v24 = vsub.f32 %v7315_v61, %v8012_v50  ;;  %v2330_v18 = vand.u32 4294901760, %v7382_v34  ;;  %v7406_v54 = vsub.f32 %v2134_v56, %v7384_v46  ;;  %v8013_v51 = vand.u32 4294901760, %v7358_v47 }
 0x3f2   : > { %v2292_v8 = vand.u32 4294901760, %v2291_v16  ;;  %v2340_v50 = vand.u32 4294901760, %v7396_v9  ;;  %v7416_v60 = vsub.f32 %v2137_v13, %v7398_v17  ;;  %v2321_v56 = vsub.f32 %v7377_v58, %v2320_v3 }
 0x3f3   : > { %5541 = vmatmul.mubr.f32.gmra.mrb[12].mxu1 %v2262_v12  ;;  %5567 = vmatmul.mubr.f32.vlgmr.msra.gmra.mrb[4].mxu0 %v7258_v32  ;;  %v2311_v4 = vsub.f32 %v7358_v47, %v8013_v51  ;;  %v2282_v12 = vand.u32 4294901760, %v2281_v24  ;;  %v2350_v16 = vand.u32 4294901760, %v7406_v54  ;;  %v2331_v24 = vsub.f32 %v7382_v34, %v2330_v18 }
 0x3f4   : > { %5543 = vmatprep.mubr.f32.mxu1 %v2272_v35  ;;  %5569 = vmatprep.mubr.f32.mxu0 %v7268_v40  ;;  %v2302_v35 = vand.u32 4294901760, %v2301_v49  ;;  %v2360_v13 = vand.u32 4294901760, %v7416_v60  ;;  %v2322_v49 = vand.u32 4294901760, %v2321_v56 }
 0x3f5   : > { %6193 = vmatpush3.bf16.msra.mxu0 %v7319_v21  ;;  %v2312_v21 = vand.u32 4294901760, %v2311_v4  ;;  %v2332_v51 = vand.u32 4294901760, %v2331_v24  ;;  %v8015_v24 = vand.u32 4294901760, %v7261_v48 }
 0x3f6   : > { %6195 = vmatprep.subr.bf16.mxu0 %v7337_v45 }
 0x3f7   : > { %5544 = vmatmul.mubr.f32.gmra.mrb[14].mxu1 %v2282_v12  ;;  %5570 = vmatmul.mubr.f32.gmra.mrb[6].mxu0 %v7270_v52  ;;  %v2361_v12 = vsub.f32 %v7416_v60, %v2360_v13 }
 0x3f8   : > { %5546 = vmatprep.mubr.f32.mxu1 %v2292_v8  ;;  %5572 = vmatprep.mubr.f32.mxu0 %v7272_v53  ;;  %v2341_v8 = vsub.f32 %v7396_v9, %v2340_v50 }
 0x3f9   : > { %6197 = vmatpush3.bf16.msra.mxu0 %v7337_v45  ;;  %v2351_v45 = vsub.f32 %v7406_v54, %v2350_v16  ;;  %v2362_v56 = vand.u32 4294901760, %v2361_v12 }
 0x3fa   : > { %6199 = vmatprep.subr.bf16.mxu0 %v7308_v14  ;;  %v2342_v4 = vand.u32 4294901760, %v2341_v8  ;;  %v8017_v8 = vand.u32 4294901760, %v7285_v38 }
 0x3fb   : > { %5547 = vmatmul.mubr.f32.gmra.mrb[16].mxu1 %v2302_v35  ;;  %5573 = vmatmul.mubr.f32.gmra.mrb[8].mxu0 %v7274_v2  ;;  %v2352_v35 = vand.u32 4294901760, %v2351_v45 }
 0x3fc   : > { %5575 = vmatprep.mubr.f32.mxu0 %v7297_v5  ;;  %5549 = vmatprep.mubr.f32.mxu1 %v2312_v21  ;;  %v8014_v21 = vand.u32 4294901760, %v7243_v0 }
 0x3ff   : > { %5576 = vmatmul.mubr.f32.gmra.mrb[10].mxu0 %v7299_v33  ;;  %5550 = vmatmul.mubr.f32.gmra.mrb[18].mxu1 %v2322_v49  ;;  %v8016_v49 = vand.u32 4294901760, %v7282_v28 }
 0x400   : > { %5578 = vmatprep.mubr.f32.mxu0 %v7321_v7  ;;  %5552 = vmatprep.mubr.f32.mxu1 %v2332_v51  ;;  %v8018_v51 = vand.u32 4294901760, %v7290_v62 }
 0x403   : > { %5579 = vmatmul.mubr.f32.gmra.mrb[12].mxu0 %v7329_v44  ;;  %5553 = vmatmul.mubr.f32.gmra.mrb[20].mxu1 %v2342_v4 }
 0x404   : > { %5581 = vmatprep.mubr.f32.mxu0 %v7334_v10  ;;  %5555 = vmatprep.mubr.f32.mxu1 %v2352_v35 }
 0x407   : > { %5582 = vmatmul.mubr.f32.gmra.mrb[14].mxu0 %v7360_v43  ;;  %5556 = vmatmul.mubr.f32.gmra.mrb[22].mxu1 %v2362_v56 }
 0x408   : > { %5584 = vmatprep.mubr.f32.mxu0 %v7364_v39  ;;  %5750 = vmatprep.mubr.f32.mxu1 %v7020_v36 }
 0x40b   : > { %5585 = vmatmul.mubr.f32.gmra.mrb[16].mxu0 %v7379_v11 }
 0x40c   : > { %5587 = vmatprep.mubr.f32.mxu0 %v7384_v46 }
 0x40f   : > { %5588 = vmatmul.mubr.f32.gmra.mrb[18].mxu0 %v7398_v17 }
 0x410   : > { %5598 = vmatprep.mubr.f32.mxu0 %v7243_v0  ;;  %v8019_v0 = vand.u32 4294901760, %v7293_v1 }
 0x413   : > { %5599 = vmatmul.mubr.f32.vlgmr.msra.gmra.mrb[4].mxu0 %v7261_v48  ;;  %v8020_v48 = vand.u32 4294901760, %v7312_v6 }
 0x414   : > { %6201 = vmatpush3.bf16.msra.mxu0 %v7308_v14  ;;  %5601 = vmatprep.mubr.f32.mxu0 %v7282_v28  ;;  %v8021_v28 = vand.u32 4294901760, %v7315_v61 }
 0x415   : > { %6203 = vmatprep.subr.bf16.mxu0 %v7325_v55 }
 0x417   : > { %5602 = vmatmul.mubr.f32.gmra.mrb[6].mxu0 %v7285_v38  ;;  %v8023_v38 = vand.u32 4294901760, %v7355_v31 }
 0x418   : > { %6205 = vmatpush3.bf16.msra.mxu0 %v7325_v55  ;;  %5604 = vmatprep.mubr.f32.mxu0 %v7290_v62  ;;  %v8024_v62 = vand.u32 4294901760, %v7358_v47 }
 0x419   : > { %6207 = vmatprep.subr.bf16.mxu0 %v7327_v63 }
 0x41b   : > { %5605 = vmatmul.mubr.f32.gmra.mrb[8].mxu0 %v7293_v1 }
 0x41c   : > { %5607 = vmatprep.mubr.f32.mxu0 %v7312_v6 }
 0x41f   : > { %5608 = vmatmul.mubr.f32.gmra.mrb[10].mxu0 %v7315_v61 }
 0x420   : > { %5610 = vmatprep.mubr.f32.mxu0 %v7340_v15 }
 0x423   : > { %5611 = vmatmul.mubr.f32.gmra.mrb[12].mxu0 %v7355_v31 }
 0x424   : > { %5613 = vmatprep.mubr.f32.mxu0 %v7358_v47 }
 0x427   : > { %5614 = vmatmul.mubr.f32.gmra.mrb[14].mxu0 %v7377_v58 }
 0x428   : > { %5616 = vmatprep.mubr.f32.mxu0 %v7382_v34 }
 0x42b   : > { %5617 = vmatmul.mubr.f32.gmra.mrb[16].mxu0 %v7396_v9 }
 0x42c   : > { %5619 = vmatprep.mubr.f32.mxu0 %v7406_v54 }
 0x42f   : > { %5620 = vmatmul.mubr.f32.gmra.mrb[18].mxu0 %v7416_v60 }
 0x430   : > { %5630 = vmatprep.mubr.f32.mxu0 %v8014_v21 }
 0x433   : > { %5631 = vmatmul.mubr.f32.vlgmr.msra.gmra.mrb[4].mxu0 %v8015_v24 }
 0x434   : > { %6209 = vmatpush3.bf16.msra.mxu0 %v7327_v63  ;;  %5633 = vmatprep.mubr.f32.mxu0 %v8016_v49  ;;  %v8022_v63 = vand.u32 4294901760, %v7340_v15 }
 0x435   : > { %6211 = vmatprep.subr.bf16.mxu0 %v7348_v57 }
 0x437   : > { %5634 = vmatmul.mubr.f32.gmra.mrb[6].mxu0 %v8017_v8 }
 0x438   : > { %6213 = vmatpush3.bf16.msra.mxu0 %v7348_v57  ;;  %5636 = vmatprep.mubr.f32.mxu0 %v8018_v51 }
 0x439   : > { %6215 = vmatprep.subr.bf16.mxu0 %v7308_v14 }
 0x43b   : > { %5637 = vmatmul.mubr.f32.gmra.mrb[8].mxu0 %v8019_v0 }
 0x43c   : > { %5639 = vmatprep.mubr.f32.mxu0 %v8020_v48 }
 0x43f   : > { %5640 = vmatmul.mubr.f32.gmra.mrb[10].mxu0 %v8021_v28 }
 0x440   : > { %5642 = vmatprep.mubr.f32.mxu0 %v8022_v63 }
 0x443   : > { %5643 = vmatmul.mubr.f32.gmra.mrb[12].mxu0 %v8023_v38 }
 0x444   : > { %5645 = vmatprep.mubr.f32.mxu0 %v8024_v62 }
 0x447   : > { %5646 = vmatmul.mubr.f32.gmra.mrb[14].mxu0 %v2320_v3 }
 0x448   : > { %5648 = vmatprep.mubr.f32.mxu0 %v2330_v18 }
 0x44b   : > { %5649 = vmatmul.mubr.f32.gmra.mrb[16].mxu0 %v2340_v50 }
 0x44c   : > { %5651 = vmatprep.mubr.f32.mxu0 %v2350_v16 }
 0x44f   : > { %5652 = vmatmul.mubr.f32.gmra.mrb[18].mxu0 %v2360_v13 }
 0x450   : > { %5662 = vmatprep.mubr.f32.mxu0 %v7200_v59 }
 0x453   : > { %5663 = vmatmul.mubr.f32.vlgmr.msra.gmra.mrb[4].mxu0 %v7258_v32 }
 0x454   : > { %6217 = vmatpush3.bf16.msra.mxu0 %v7308_v14  ;;  %5665 = vmatprep.mubr.f32.mxu0 %v7268_v40 }
 0x455   : > { %6219 = vmatprep.subr.bf16.mxu0 %v7325_v55 }
 0x457   : > { %5666 = vmatmul.mubr.f32.gmra.mrb[6].mxu0 %v7270_v52 }
 0x458   : > { %6221 = vmatpush3.bf16.msra.mxu0 %v7325_v55  ;;  %5668 = vmatprep.mubr.f32.mxu0 %v7272_v53 }
 0x45b   : > { %5669 = vmatmul.mubr.f32.gmra.mrb[8].mxu0 %v7274_v2 }
 0x45c   : > { %5671 = vmatprep.mubr.f32.mxu0 %v7297_v5 }
 0x45f   : > { %5672 = vmatmul.mubr.f32.gmra.mrb[10].mxu0 %v7299_v33 }
 0x460   : > { %5674 = vmatprep.mubr.f32.mxu0 %v7321_v7 }
 0x463   : > { %5675 = vmatmul.mubr.f32.gmra.mrb[12].mxu0 %v7329_v44 }
 0x464   : > { %5677 = vmatprep.mubr.f32.mxu0 %v7334_v10 }
 0x467   : > { %5678 = vmatmul.mubr.f32.gmra.mrb[14].mxu0 %v7360_v43 }
 0x468   : > { %5680 = vmatprep.mubr.f32.mxu0 %v7364_v39 }
 0x46b   : > { %5681 = vmatmul.mubr.f32.gmra.mrb[16].mxu0 %v7379_v11 }
 0x46c   : > { %5683 = vmatprep.mubr.f32.mxu0 %v7384_v46 }
 0x46f   : > { %5684 = vmatmul.mubr.f32.gmra.mrb[18].mxu0 %v7398_v17 }
 0x470   : > { %5694 = vmatprep.mubr.f32.mxu0 %v7200_v59 }
 0x473   : > { %5695 = vmatmul.mubr.f32.vlgmr.msra.gmra.mrb[4].mxu0 %v7258_v32 }
 0x474   : > { %5697 = vmatprep.mubr.f32.mxu0 %v7268_v40 }
 0x477   : > { %5698 = vmatmul.mubr.f32.gmra.mrb[6].mxu0 %v7270_v52 }
 0x478   : > { %5700 = vmatprep.mubr.f32.mxu0 %v7272_v53 }
 0x47b   : > { %5701 = vmatmul.mubr.f32.gmra.mrb[8].mxu0 %v7274_v2 }
 0x47c   : > { %5703 = vmatprep.mubr.f32.mxu0 %v7297_v5 }
 0x47f   : > { %5704 = vmatmul.mubr.f32.gmra.mrb[10].mxu0 %v7299_v33 }
 0x480   : > { %5706 = vmatprep.mubr.f32.mxu0 %v7321_v7 }
 0x483   : > { %5707 = vmatmul.mubr.f32.gmra.mrb[12].mxu0 %v7329_v44 }
 0x484   : > { %5709 = vmatprep.mubr.f32.mxu0 %v7334_v10 }
 0x487   : > { %5710 = vmatmul.mubr.f32.gmra.mrb[14].mxu0 %v7360_v43 }
 0x488   : > { %5712 = vmatprep.mubr.f32.mxu0 %v7364_v39 }
 0x48b   : > { %5713 = vmatmul.mubr.f32.gmra.mrb[16].mxu0 %v7379_v11 }
 0x48c   : > { %5715 = vmatprep.mubr.f32.mxu0 %v7384_v46 }
 0x48f   : > { %5716 = vmatmul.mubr.f32.gmra.mrb[18].mxu0 %v7398_v17 }
 0x4be   : > { %v5536_v6 = vpop.f32.mrb[8].mxu1 }
 0x4bf   : > { %v2214_v5 = vpop.f32.mrb[9].mxu1 }
 0x4c2   : > { %v5539_v14 = vpop.f32.mrb[10].mxu1 }
 0x4c3   : > { %v2234_v31 = vpop.f32.mrb[11].mxu1 }
 0x4c6   : > { %v5542_v59 = vpop.f32.mrb[12].mxu1 }
 0x4c7   : > { %v2254_v1 = vpop.f32.mrb[13].mxu1 }
 0x4ca   : > { %v5545_v32 = vpop.f32.mrb[14].mxu1 }
 0x4cb   : > { %v2274_v44 = vpop.f32.mrb[15].mxu1 }
 0x4ce   : > { %v5548_v40 = vpop.f32.mrb[16].mxu1 }
 0x4cf   : > { %v2294_v10 = vpop.f32.mrb[17].mxu1 }
 0x4d2   : > { %v5551_v52 = vpop.f32.mrb[18].mxu1 }
 0x4d3   : > { %v2314_v53 = vpop.f32.mrb[19].mxu1 }
 0x4d6   : > { %v5554_v2 = vpop.f32.mrb[20].mxu1 }
 0x4d7   : > { %v2334_v33 = vpop.f32.mrb[21].mxu1 }
 0x4da   : > { %v5557_v61 = vpop.f32.mrb[22].mxu1 }
 0x4db   : > { %v2354_v7 = vpop.f32.mrb[23].mxu1 }
 0x546   : > { %v5696_v55 = vpop.f32.mrb[4].mxu0 }
 0x547   : > { %v7542_v15 = vadd.f32 %v5696_v55, %v5536_v6  ;;  %v3175_v57 = vpop.f32.mrb[5].mxu0 }
 0x548   : > { %v7544_v47 = vadd.f32 %v3175_v57, %v2214_v5 }
 0x54a   : > { %v5699_v43 = vpop.f32.mrb[6].mxu0 }
 0x54b   : > { %v7546_v60 = vadd.f32 %v5699_v43, %v5539_v14  ;;  %v3187_v9 = vpop.f32.mrb[7].mxu0 }
 0x54c   : > { %v7548_v39 = vadd.f32 %v3187_v9, %v2234_v31 }
 0x54e   : > { %v5702_v58 = vpop.f32.mrb[8].mxu0 }
 0x54f   : > { %v7550_v11 = vadd.f32 %v5702_v58, %v5542_v59  ;;  %v3199_v34 = vpop.f32.mrb[9].mxu0 }
 0x550   : > { %v7552_v46 = vadd.f32 %v3199_v34, %v2254_v1 }
 0x551   : > { %v3270_v36 = vmax.f32 %v7542_v15, %v7550_v11 }
 0x552   : > { %v3269_v3 = vmax.f32 %v7544_v47, %v7552_v46  ;;  %v5705_v17 = vpop.f32.mrb[10].mxu0 }
 0x553   : > { %v7558_v18 = vadd.f32 %v5705_v17, %v5545_v32  ;;  %v3211_v54 = vpop.f32.mrb[11].mxu0 }
 0x554   : > { %v6477_v50 = vadd.f32 %v3211_v54, %v2274_v44 }
 0x555   : > { %v3272_v16 = vmax.f32 %v7546_v60, %v7558_v18 }
 0x556   : > { %v3271_v13 = vmax.f32 %v7548_v39, %v6477_v50  ;;  %v5708_v45 = vpop.f32.mrb[12].mxu0 }
 0x557   : > { %v7563_v4 = vadd.f32 %v5708_v45, %v5548_v40  ;;  %v3223_v12 = vpop.f32.mrb[13].mxu0 }
 0x558   : > { %v6479_v35 = vadd.f32 %v3223_v12, %v2294_v10 }
 0x559   : > { %v3274_v56 = vmax.f32 %v3270_v36, %v7563_v4 }
 0x55a   : > { %v3273_v21 = vmax.f32 %v3269_v3, %v6479_v35  ;;  %v5711_v24 = vpop.f32.mrb[14].mxu0 }
 0x55b   : > { %v6480_v49 = vadd.f32 %v5711_v24, %v5551_v52  ;;  %v3235_v8 = vpop.f32.mrb[15].mxu0 }
 0x55c   : > { %v6481_v51 = vadd.f32 %v3235_v8, %v2314_v53 }
 0x55d   : > { %v3276_v0 = vmax.f32 %v3272_v16, %v6480_v49 }
 0x55e   : > { %v3275_v48 = vmax.f32 %v3271_v13, %v6481_v51  ;;  %v5714_v28 = vpop.f32.mrb[16].mxu0 }
 0x55f   : > { %v6482_v63 = vadd.f32 %v5714_v28, %v5554_v2  ;;  %v3247_v38 = vpop.f32.mrb[17].mxu0 }
 0x560   : > { %v6483_v62 = vadd.f32 %v3247_v38, %v2334_v33 }
 0x561   : > { %v3278_v6 = vmax.f32 %v3274_v56, %v6482_v63 }
 0x562   : > { %v3277_v5 = vmax.f32 %v3273_v21, %v6483_v62  ;;  %v5717_v14 = vpop.f32.mrb[18].mxu0 }
 0x563   : > { %v6484_v31 = vadd.f32 %v5717_v14, %v5557_v61  ;;  %v3259_v59 = vpop.f32.mrb[19].mxu0 }
 0x564   : > { %v3281_v1 = vmax.f32 %v3277_v5, %v3278_v6  ;;  %v6485_v32 = vadd.f32 %v3259_v59, %v2354_v7 }
 0x565   : > { %v3280_v44 = vmax.f32 %v3276_v0, %v6484_v31 }
 0x566   : > { %v3279_v40 = vmax.f32 %v3275_v48, %v6485_v32 }
 0x568   : > { %v3282_v10 = vmax.f32 %v3279_v40, %v3280_v44 }
 0x56a   : > { %v3283_v55 = vmax.f32 %v3281_v1, %v3282_v10 }
 0x56c   : > { %v3284_v52 = vrot.slane %v3283_v55, 4 }
 0x56e   : > { %v3285_v57 = vmax.f32 %v3283_v55, %v3284_v52 }
 0x570   : > { %v3286_v53 = vrot.slane %v3285_v57, 2 }
 0x572   : > { %v3287_v43 = vmax.f32 %v3285_v57, %v3286_v53 }
 0x574   : > { %v3288_v9 = vrot.slane %v3287_v43, 1 }
 0x576   : > { %v3289_v58 = vmax.f32 %v3287_v43, %v3288_v9 }
 0x578   : > { %v3293_v2 = vsub.f32 %v7544_v47, %v3289_v58  ;;  %v3294_v33 = vsub.f32 %v7542_v15, %v3289_v58  ;;  %v3295_v34 = vsub.f32 %v7548_v39, %v3289_v58  ;;  %v3296_v61 = vsub.f32 %v7546_v60, %v3289_v58 }
 0x579   : > { %v3297_v7 = vsub.f32 %v7552_v46, %v3289_v58  ;;  %v3298_v36 = vsub.f32 %v7550_v11, %v3289_v58  ;;  %v3299_v3 = vsub.f32 %v6477_v50, %v3289_v58  ;;  %v3300_v17 = vsub.f32 %v7558_v18, %v3289_v58 }
 0x57a   : > { %v3301_v54 = vsub.f32 %v6479_v35, %v3289_v58  ;;  %v3302_v16 = vsub.f32 %v7563_v4, %v3289_v58  ;;  %v3303_v13 = vsub.f32 %v6481_v51, %v3289_v58  ;;  %v3304_v45 = vsub.f32 %v6480_v49, %v3289_v58 }
 0x57b   : > { %v3305_v12 = vsub.f32 %v6483_v62, %v3289_v58  ;;  %v3306_v47 = vsub.f32 %v6482_v63, %v3289_v58  ;;  %v3307_v56 = vsub.f32 %v6485_v32, %v3289_v58  ;;  %v3308_v15 = vsub.f32 %v6484_v31, %v3289_v58 }
 0x57c   : > { %v3309_v21 = vmul.f32 1.442695, %v3293_v2  ;;  %v3311_v39 = vmul.f32 1.442695, %v3294_v33  ;;  %v3313_v24 = vmul.f32 1.442695, %v3295_v34 }
 0x57d   : > { %v3315_v60 = vmul.f32 1.442695, %v3296_v61  ;;  %v3317_v46 = vmul.f32 1.442695, %v3297_v7  ;;  %v3319_v11 = vmul.f32 1.442695, %v3298_v36 }
 0x57e   : > { %6687 = vpow2.f32 %v3309_v21  ;;  %v3321_v50 = vmul.f32 1.442695, %v3299_v3  ;;  %v3323_v18 = vmul.f32 1.442695, %v3300_v17  ;;  %v3325_v4 = vmul.f32 1.442695, %v3301_v54 }
 0x57f   : > { %6689 = vpow2.f32 %v3311_v39  ;;  %v3327_v35 = vmul.f32 1.442695, %v3302_v16  ;;  %v3329_v49 = vmul.f32 1.442695, %v3303_v13  ;;  %v3331_v8 = vmul.f32 1.442695, %v3304_v45 }
 0x580   : > { %6691 = vpow2.f32 %v3313_v24  ;;  %v3333_v51 = vmul.f32 1.442695, %v3305_v12  ;;  %v3335_v0 = vmul.f32 1.442695, %v3306_v47  ;;  %v3290_v48 = vsub.f32 -inf, %v3289_v58 }
 0x581   : > { %6693 = vpow2.f32 %v3315_v60  ;;  %v3337_v63 = vmul.f32 1.442695, %v3307_v56  ;;  %v3339_v62 = vmul.f32 1.442695, %v3308_v15 }
 0x582   : > { %6695 = vpow2.f32 %v3317_v46  ;;  %v7576_v44 = vmul.f32 1.442695, %v3290_v48 }
 0x583   : > { %6697 = vpow2.f32 %v3319_v11 }
 0x584   : > { %6699 = vpow2.f32 %v3321_v50 }
 0x585   : > { %6701 = vpow2.f32 %v3323_v18 }
 0x586   : > { %6703 = vpow2.f32 %v3325_v4 }
 0x587   : > { %6705 = vpow2.f32 %v3327_v35 }
 0x588   : > { %v6688_v28 = vpop.eup %6687  ;;  %6707 = vpow2.f32 %v3329_v49 }
 0x589   : > { %v6690_v38 = vpop.eup %6689  ;;  %6709 = vpow2.f32 %v3331_v8  ;;  %v3365_v6 = vand.u32 4294901760, %v6688_v28 }
 0x58a   : > { %v6692_v5 = vpop.eup %6691  ;;  %6711 = vpow2.f32 %v3333_v51  ;;  %v3342_v14 = vadd.f32 %v6690_v38, %v6688_v28  ;;  %v3368_v31 = vand.u32 4294901760, %v6690_v38 }
 0x58b   : > { %v6694_v59 = vpop.eup %6693  ;;  %6713 = vpow2.f32 %v3335_v0  ;;  %v3371_v1 = vand.u32 4294901760, %v6692_v5  ;;  %v7574_v32 = vsub.f32 %v6688_v28, %v3365_v6 }
 0x58c   : > { %v6696_v40 = vpop.eup %6695  ;;  %6715 = vpow2.f32 %v3337_v63  ;;  %v3343_v10 = vadd.f32 %v6692_v5, %v3342_v14  ;;  %v7578_v55 = vpack.c.bf16 %v3368_v31, %v3365_v6  ;;  %v3374_v52 = vand.u32 4294901760, %v6694_v59 }
 0x58d   : > { %v6698_v57 = vpop.eup %6697  ;;  %6717 = vpow2.f32 %v3339_v62  ;;  %v3377_v53 = vand.u32 4294901760, %v6696_v40  ;;  %v7957_v43 = vand.u32 4294901760, %v7574_v32  ;;  %v7581_v9 = vsub.f32 %v6690_v38, %v3368_v31 }
 0x58e   : > { %v6700_v58 = vpop.eup %6699  ;;  %v3344_v2 = vadd.f32 %v6694_v59, %v3343_v10  ;;  %6223 = vmatprep.subr.bf16.mxu1 %v7578_v55  ;;  %v7584_v33 = vpack.c.bf16 %v3374_v52, %v3371_v1  ;;  %v3380_v34 = vand.u32 4294901760, %v6698_v57  ;;  %v7586_v61 = vsub.f32 %v6692_v5, %v3371_v1 }
 0x58f   : > { %v6702_v7 = vpop.eup %6701  ;;  %6225 = vmatpush3.bf16.msra.mxu1 %v7578_v55  ;;  %v3383_v36 = vand.u32 4294901760, %v6700_v58  ;;  %v3489_v3 = vsub.f32 %v7574_v32, %v7957_v43  ;;  %v7955_v17 = vand.u32 4294901760, %v7581_v9  ;;  %v7593_v54 = vsub.f32 %v6694_v59, %v3374_v52 }
 0x590   : > { %v6704_v16 = vpop.eup %6703  ;;  %v3345_v13 = vadd.f32 %v6696_v40, %v3344_v2  ;;  %6227 = vmatprep.subr.bf16.mxu1 %v7584_v33  ;;  %v7596_v45 = vpack.c.bf16 %v3380_v34, %v3377_v53  ;;  %v3386_v12 = vand.u32 4294901760, %v6702_v7  ;;  %v7953_v47 = vand.u32 4294901760, %v7586_v61 }
 0x591   : > { %v6706_v56 = vpop.eup %6705  ;;  %v3389_v15 = vand.u32 4294901760, %v6704_v16  ;;  %v3490_v21 = vand.u32 4294901760, %v3489_v3  ;;  %v3496_v39 = vsub.f32 %v7581_v9, %v7955_v17  ;;  %v7952_v24 = vand.u32 4294901760, %v7593_v54 }
 0x592   : > { %8025 = vst [vmem:[#allocation36_spill] sm:$0xff] %v7596_v45  ;;  %v6708_v60 = vpop.eup %6707  ;;  %v3346_v46 = vadd.f32 %v6698_v57, %v3345_v13  ;;  %v7603_v11 = vpack.c.bf16 %v3386_v12, %v3383_v36  ;;  %v3392_v50 = vand.u32 4294901760, %v6706_v56  ;;  %v3503_v18 = vsub.f32 %v7586_v61, %v7953_v47 }
 0x593   : > { %v6710_v4 = vpop.eup %6709  ;;  %6229 = vmatpush3.bf16.msra.mxu1 %v7584_v33  ;;  %v3395_v35 = vand.u32 4294901760, %v6708_v60  ;;  %v3497_v49 = vand.u32 4294901760, %v3496_v39  ;;  %v3510_v8 = vsub.f32 %v7593_v54, %v7952_v24  ;;  %v7612_v51 = vsub.f32 %v6696_v40, %v3377_v53 }
 0x594   : > { %8026 = vst [vmem:[#allocation37_spill] sm:$0xff] %v7603_v11  ;;  %v6712_v0 = vpop.eup %6711  ;;  %v3347_v48 = vadd.f32 %v6700_v58, %v3346_v46  ;;  %6231 = vmatprep.subr.bf16.mxu1 %v7596_v45  ;;  %v7615_v28 = vpack.c.bf16 %v3392_v50, %v3389_v15  ;;  %v3398_v63 = vand.u32 4294901760, %v6710_v4  ;;  %v3504_v38 = vand.u32 4294901760, %v3503_v18 }
 0x595   : > { %v6714_v62 = vpop.eup %6713  ;;  %v3401_v6 = vand.u32 4294901760, %v6712_v0  ;;  %v7617_v5 = vpack.c.bf16 %v3497_v49, %v3490_v21  ;;  %v3511_v14 = vand.u32 4294901760, %v3510_v8  ;;  %v7951_v31 = vand.u32 4294901760, %v7612_v51 }
 0x596   : > { %8027 = vst [vmem:[#allocation38_spill] sm:$0xff] %v7615_v28  ;;  %v7620_v59 = vpop.eup %6715  ;;  %v3348_v1 = vadd.f32 %v6702_v7, %v3347_v48  ;;  %v7622_v40 = vpack.c.bf16 %v3398_v63, %v3395_v35  ;;  %v3404_v10 = vand.u32 4294901760, %v6714_v62  ;;  %v7624_v52 = vsub.f32 %v6698_v57, %v3380_v34 }
 0x597   : > { %v7626_v53 = vpop.eup %6717  ;;  %6233 = vmatpush3.bf16.msra.mxu1 %v7596_v45  ;;  %v3407_v2 = vand.u32 4294901760, %v7620_v59  ;;  %v7630_v3 = vpack.c.bf16 %v3511_v14, %v3504_v38  ;;  %v3517_v13 = vsub.f32 %v7612_v51, %v7951_v31  ;;  %v7635_v21 = vsub.f32 %v6700_v58, %v3383_v36 }
 0x598   : > { %8028 = vst [vmem:[#allocation39_spill] sm:$0xff] %v7622_v40  ;;  %v3349_v39 = vadd.f32 %v6704_v16, %v3348_v1  ;;  %6235 = vmatprep.subr.bf16.mxu1 %v7603_v11  ;;  %v7638_v46 = vpack.c.bf16 %v3404_v10, %v3401_v6  ;;  %v3410_v57 = vand.u32 4294901760, %v7626_v53  ;;  %v7949_v34 = vand.u32 4294901760, %v7624_v52 }
 0x599   : > { %v3518_v18 = vand.u32 4294901760, %v3517_v13  ;;  %v7950_v49 = vand.u32 4294901760, %v7635_v21  ;;  %v7643_v8 = vsub.f32 %v6702_v7, %v3386_v12  ;;  %v7645_v48 = vsub.f32 %v6704_v16, %v3389_v15 }
 0x59a   : > { %8029 = vst [vmem:[#allocation40_spill] sm:$0xff] %v7638_v46  ;;  %v3350_v38 = vadd.f32 %v6706_v56, %v3349_v39  ;;  %v7647_v14 = vpack.c.bf16 %v3410_v57, %v3407_v2  ;;  %v3524_v58 = vsub.f32 %v7624_v52, %v7949_v34  ;;  %v7652_v36 = vsub.f32 %v6706_v56, %v3392_v50 }
 0x59b   : > { %6237 = vmatpush3.bf16.msra.mxu1 %v7603_v11  ;;  %v3531_v1 = vsub.f32 %v7635_v21, %v7950_v49  ;;  %v7954_v7 = vand.u32 4294901760, %v7643_v8  ;;  %v7956_v16 = vand.u32 4294901760, %v7645_v48  ;;  %v7660_v12 = vsub.f32 %v6708_v60, %v3395_v35 }
 0x59c   : > { %v3351_v15 = vadd.f32 %v6708_v60, %v3350_v38  ;;  %6239 = vmatprep.subr.bf16.mxu1 %v7615_v28  ;;  %v3525_v13 = vand.u32 4294901760, %v3524_v58  ;;  %v3551_v39 = vand.u32 4294901760, %v7652_v36  ;;  %v3564_v56 = vsub.f32 %v6710_v4, %v3398_v63 }
 0x59d   : > { %v3532_v50 = vand.u32 4294901760, %v3531_v1  ;;  %v3538_v34 = vsub.f32 %v7643_v8, %v7954_v7  ;;  %v3545_v49 = vsub.f32 %v7645_v48, %v7956_v16  ;;  %v3558_v31 = vand.u32 4294901760, %v7660_v12 }
 0x59e   : > { %v3352_v35 = vadd.f32 %v6710_v4, %v3351_v15  ;;  %v7671_v24 = vpack.c.bf16 %v3525_v13, %v3518_v18  ;;  %v3552_v60 = vsub.f32 %v7652_v36, %v3551_v39  ;;  %v3565_v38 = vand.u32 4294901760, %v3564_v56 }
 0x59f   : > { %6241 = vmatpush3.bf16.msra.mxu1 %v7615_v28  ;;  %v3539_v63 = vand.u32 4294901760, %v3538_v34  ;;  %v3546_v58 = vand.u32 4294901760, %v3545_v49  ;;  %v3559_v1 = vsub.f32 %v7660_v12, %v3558_v31  ;;  %v3571_v47 = vsub.f32 %v6712_v0, %v3401_v6 }
 0x5a0   : > { %v3353_v7 = vadd.f32 %v6712_v0, %v3352_v35  ;;  %6243 = vmatprep.subr.bf16.mxu1 %v7622_v40  ;;  %v3553_v17 = vand.u32 4294901760, %v3552_v60  ;;  %v3566_v16 = vsub.f32 %v3564_v56, %v3565_v38  ;;  %v3578_v43 = vsub.f32 %v6714_v62, %v3404_v10 }
 0x5a1   : > { %v7677_v11 = vpack.c.bf16 %v3539_v63, %v3532_v50  ;;  %v3560_v4 = vand.u32 4294901760, %v3559_v1  ;;  %v3572_v18 = vand.u32 4294901760, %v3571_v47  ;;  %v3585_v15 = vsub.f32 %v7620_v59, %v3407_v2 }
 0x5a2   : > { %v3354_v13 = vadd.f32 %v6714_v62, %v3353_v7  ;;  %v6270_v45 = vpack.c.bf16 %v3553_v17, %v3546_v58  ;;  %v3567_v28 = vand.u32 4294901760, %v3566_v16  ;;  %v3579_v34 = vand.u32 4294901760, %v3578_v43 }
 0x5a3   : > { %6245 = vmatpush3.bf16.msra.mxu1 %v7622_v40  ;;  %v3573_v49 = vsub.f32 %v3571_v47, %v3572_v18  ;;  %v3586_v6 = vand.u32 4294901760, %v3585_v15  ;;  %v3592_v0 = vsub.f32 %v7626_v53, %v3410_v57  ;;  %v7684_v35 = vpack.c.bf16 %v7581_v9, %v7574_v32 }
 0x5a4   : > { %v3355_v10 = vadd.f32 %v7620_v59, %v3354_v13  ;;  %6247 = vmatprep.subr.bf16.mxu1 %v7638_v46  ;;  %v6274_v50 = vpack.c.bf16 %v3567_v28, %v3560_v4  ;;  %v3580_v2 = vsub.f32 %v3578_v43, %v3579_v34  ;;  %v7690_v17 = vpack.c.bf16 %v7593_v54, %v7586_v61 }
 0x5a5   : > { %v3574_v62 = vand.u32 4294901760, %v3573_v49  ;;  %v3587_v7 = vsub.f32 %v3585_v15, %v3586_v6  ;;  %v3593_v16 = vand.u32 4294901760, %v3592_v0  ;;  %v6294_v57 = vpack.c.bf16 %v7624_v52, %v7612_v51 }
 0x5a6   : > { %v3356_v60 = vadd.f32 %v7626_v53, %v3355_v10  ;;  %v3581_v63 = vand.u32 4294901760, %v3580_v2  ;;  %v6298_v59 = vpack.c.bf16 %v7643_v8, %v7635_v21  ;;  %v6302_v28 = vpack.c.bf16 %v7652_v36, %v7645_v48 }
 0x5a7   : > { %6249 = vmatpush3.bf16.msra.mxu1 %v7638_v46  ;;  %v3588_v58 = vand.u32 4294901760, %v3587_v7  ;;  %v3594_v1 = vsub.f32 %v3592_v0, %v3593_v16  ;;  %v6306_v4 = vpack.c.bf16 %v3564_v56, %v7660_v12  ;;  %v6310_v13 = vpack.c.bf16 %v3578_v43, %v3571_v47 }
 0x5a8   : > { %v3357_v49 = vrot.slane %v3356_v60, 4  ;;  %6251 = vmatprep.subr.bf16.mxu1 %v7647_v14  ;;  %v6278_v40 = vpack.c.bf16 %v3581_v63, %v3574_v62  ;;  %v6314_v30 = vpack.c.bf16 %v3592_v0, %v3585_v15  ;;  %v8030_v53 = vand.u32 4294901760, %v7574_v32 }
 0x5a9   : > { %v8031_v10 = vand.u32 4294901760, %v7581_v9  ;;  %v3595_v29 = vand.u32 4294901760, %v3594_v1  ;;  %v8032_v36 = vand.u32 4294901760, %v7586_v61  ;;  %v8033_v7 = vand.u32 4294901760, %v7593_v54 }
 0x5aa   : > { %v8034_v43 = vand.u32 4294901760, %v7612_v51  ;;  %v8035_v47 = vand.u32 4294901760, %v7624_v52  ;;  %v8036_v56 = vand.u32 4294901760, %v7635_v21  ;;  %v8037_v32 = vand.u32 4294901760, %v7643_v8 }
 0x5ab   : > { %v7706_v2 = vpack.c.bf16 %v8031_v10, %v8030_v53  ;;  %v7712_v46 = vpack.c.bf16 %v8033_v7, %v8032_v36  ;;  %v8038_v15 = vand.u32 4294901760, %v7645_v48  ;;  %v7730_v61 = vpack.c.bf16 %v3565_v38, %v3558_v31  ;;  %6253 = vmatpush3.bf16.msra.mxu1 %v7647_v14 }
 0x5ac   : > { %v7718_v12 = vpack.c.bf16 %v8035_v47, %v8034_v43  ;;  %v7724_v9 = vpack.c.bf16 %v8037_v32, %v8036_v56  ;;  %v7732_v54 = vpack.c.bf16 %v3579_v34, %v3572_v18  ;;  %v7734_v62 = vpack.c.bf16 %v3593_v16, %v3586_v6  ;;  %6255 = vmatprep.subr.bf16.mxu1 %v7617_v5  ;;  %v8052_v34 = vld [vmem:[#allocation22_spill] sm:$0xff] }
 0x5ad   : > { %v7728_v0 = vpack.c.bf16 %v3551_v39, %v8038_v15  ;;  %v6282_v51 = vpack.c.bf16 %v3595_v29, %v3588_v58  ;;  %6719 = vpow2.f32 %v7576_v44  ;;  %v3358_v52 = vadd.f32 %v3357_v49, %v3356_v60 }
 0x5ae   : > { %5751 = vmatmul.mubr.f32.vlgmr.msra.gmra.mrb[24].mxu1 %v7022_v37  ;;  %v4173_v6 = vsel %vm695_vm0, %v8052_v34, 0 }
 0x5af   : > { %v3359_v21 = vrot.slane %v3358_v52, 2  ;;  %6257 = vmatpush3.bf16.msra.mxu1 %v7617_v5  ;;  %5753 = vmatprep.mubr.f32.mxu1 %v7037_v41  ;;  %v8040_v41 = vld [vmem:[#allocation28_spill] sm:$0xff]  ;;  %v8048_v5 = vld [vmem:[#allocation31_spill] sm:$0xff]  ;;  %v7854_v63 = vand.u32 4294901760, %v4173_v6 }
 0x5b0   : > { %6259 = vmatprep.subr.bf16.mxu1 %v7630_v3 }
 0x5b1   : > { %v3360_v31 = vadd.f32 %v3359_v21, %v3358_v52  ;;  %v7863_v36 = vsub.f32 %v4173_v6, %v7854_v63 }
 0x5b2   : > { %5754 = vmatmul.mubr.f32.gmra.mrb[26].mxu1 %v7039_v42  ;;  %v8041_v42 = vld [vmem:[#allocation36_spill] sm:$0xff] }
 0x5b3   : > { %v3361_v8 = vrot.slane %v3360_v31, 1  ;;  %6261 = vmatpush3.bf16.msra.mxu1 %v7630_v3  ;;  %5788 = vmatprep.mubr.f32.mxu1 %v6960_v19  ;;  %v8050_v3 = vld [vmem:[#allocation21_spill] sm:$0xff] }
 0x5b4   : > { %6263 = vmatprep.subr.bf16.mxu1 %v7671_v24 }
 0x5b5   : > { %v3362_v29 = vadd.f32 %v3361_v8, %v3360_v31 }
 0x5b7   : > { %v6720_v44 = vpop.eup %6719  ;;  %6265 = vmatpush3.bf16.msra.mxu1 %v7671_v24  ;;  %v8046_v24 = vld [vmem:[#allocation29_spill] sm:$0xff] }
 0x5b8   : > { %v7747_v48 = vmul.f32 0.0, %v6720_v44  ;;  %6267 = vmatprep.subr.bf16.mxu1 %v7677_v11 }
 0x5ba   : > { %v7752_v37 = vadd.f32 %v3362_v29, %v7747_v48 }
 0x5bb   : > { %6269 = vmatpush3.bf16.msra.mxu1 %v7677_v11  ;;  %v8047_v11 = vld [vmem:[#allocation30_spill] sm:$0xff] }
 0x5bc   : > { %6271 = vmatprep.subr.bf16.mxu1 %v6270_v45  ;;  %6721 = vrcp.f32 %v7752_v37 }
 0x5bf   : > { %6273 = vmatpush3.bf16.msra.mxu1 %v6270_v45  ;;  %v8045_v45 = vld [vmem:[#allocation40_spill] sm:$0xff] }
 0x5c0   : > { %6275 = vmatprep.subr.bf16.mxu1 %v6274_v50 }
 0x5c3   : > { %6277 = vmatpush3.bf16.msra.mxu1 %v6274_v50 }
 0x5c4   : > { %6279 = vmatprep.subr.bf16.mxu1 %v6278_v40 }
 0x5c7   : > { %6281 = vmatpush3.bf16.msra.mxu1 %v6278_v40 }
 0x5c8   : > { %6283 = vmatprep.subr.bf16.mxu1 %v6282_v51 }
 0x5cb   : > { %6285 = vmatpush3.bf16.msra.mxu1 %v6282_v51 }
 0x5cc   : > { %6287 = vmatprep.subr.bf16.mxu1 %v7684_v35 }
 0x5ce   : > { %5789 = vmatmul.mubr.f32.vlgmr.msra.gmra.mrb[24].mxu1 %v6963_v20 }
 0x5cf   : > { %6289 = vmatpush3.bf16.msra.mxu1 %v7684_v35  ;;  %5791 = vmatprep.mubr.f32.mxu1 %v6969_v22 }
 0x5d0   : > { %6291 = vmatprep.subr.bf16.mxu1 %v7690_v17 }
 0x5d2   : > { %5792 = vmatmul.mubr.f32.gmra.mrb[26].mxu1 %v6972_v23 }
 0x5d3   : > { %6293 = vmatpush3.bf16.msra.mxu1 %v7690_v17  ;;  %5826 = vmatprep.mubr.f32.mxu1 %v6980_v25  ;;  %v8039_v25 = vld [vmem:[#allocation27_spill] sm:$0xff] }
 0x5d4   : > { %6295 = vmatprep.subr.bf16.mxu1 %v6294_v57 }
 0x5d7   : > { %6297 = vmatpush3.bf16.msra.mxu1 %v6294_v57  ;;  %v6722_v57 = vpop.eup %6721 }
 0x5d8   : > { %6299 = vmatprep.subr.bf16.mxu1 %v6298_v59 }
 0x5db   : > { %6301 = vmatpush3.bf16.msra.mxu1 %v6298_v59 }
 0x5dc   : > { %6303 = vmatprep.subr.bf16.mxu1 %v6302_v28 }
 0x5df   : > { %6305 = vmatpush3.bf16.msra.mxu1 %v6302_v28 }
 0x5e0   : > { %6307 = vmatprep.subr.bf16.mxu1 %v6306_v4 }
 0x5e3   : > { %6309 = vmatpush3.bf16.msra.mxu1 %v6306_v4 }
 0x5e4   : > { %6311 = vmatprep.subr.bf16.mxu1 %v6310_v13 }
 0x5e7   : > { %6313 = vmatpush3.bf16.msra.mxu1 %v6310_v13 }
 0x5e8   : > { %6315 = vmatprep.subr.bf16.mxu1 %v6314_v30 }
 0x5eb   : > { %6317 = vmatpush3.bf16.msra.mxu1 %v6314_v30  ;;  %v8042_v30 = vld [vmem:[#allocation37_spill] sm:$0xff] }
 0x5ec   : > { %6319 = vmatprep.subr.bf16.mxu1 %v7578_v55 }
 0x5ee   : > { %5827 = vmatmul.mubr.f32.vlgmr.msra.gmra.mrb[24].mxu1 %v6984_v26  ;;  %v8043_v26 = vld [vmem:[#allocation38_spill] sm:$0xff] }
 0x5ef   : > { %6321 = vmatpush3.bf16.msra.mxu1 %v7578_v55  ;;  %5829 = vmatprep.mubr.f32.mxu1 %v6988_v27  ;;  %v8044_v27 = vld [vmem:[#allocation39_spill] sm:$0xff] }
 0x5f0   : > { %6323 = vmatprep.subr.bf16.mxu1 %v7584_v33 }
 0x5f2   : > { %5830 = vmatmul.mubr.f32.gmra.mrb[26].mxu1 %v8039_v25 }
 0x5f3   : > { %6325 = vmatpush3.bf16.msra.mxu1 %v7584_v33  ;;  %5864 = vmatprep.mubr.f32.mxu1 %v8040_v41 }
 0x5f4   : > { %6327 = vmatprep.subr.bf16.mxu1 %v8041_v42 }
 0x5f7   : > { %6329 = vmatpush3.bf16.msra.mxu1 %v8041_v42 }
 0x5f8   : > { %6331 = vmatprep.subr.bf16.mxu1 %v8042_v30 }
 0x5fb   : > { %6333 = vmatpush3.bf16.msra.mxu1 %v8042_v30 }
 0x5fc   : > { %6335 = vmatprep.subr.bf16.mxu1 %v8043_v26 }
 0x5ff   : > { %6337 = vmatpush3.bf16.msra.mxu1 %v8043_v26 }
 0x600   : > { %6339 = vmatprep.subr.bf16.mxu1 %v8044_v27 }
 0x603   : > { %6341 = vmatpush3.bf16.msra.mxu1 %v8044_v27 }
 0x604   : > { %6343 = vmatprep.subr.bf16.mxu1 %v8045_v45 }
 0x607   : > { %6345 = vmatpush3.bf16.msra.mxu1 %v8045_v45 }
 0x608   : > { %6347 = vmatprep.subr.bf16.mxu1 %v7647_v14 }
 0x60b   : > { %6349 = vmatpush3.bf16.msra.mxu1 %v7647_v14 }
 0x60c   : > { %6351 = vmatprep.subr.bf16.mxu1 %v7706_v2 }
 0x60e   : > { %5865 = vmatmul.mubr.f32.vlgmr.msra.gmra.mrb[24].mxu1 %v8046_v24 }
 0x60f   : > { %6353 = vmatpush3.bf16.msra.mxu1 %v7706_v2  ;;  %5867 = vmatprep.mubr.f32.mxu1 %v8047_v11 }
 0x610   : > { %6355 = vmatprep.subr.bf16.mxu1 %v7712_v46 }
 0x612   : > { %5868 = vmatmul.mubr.f32.gmra.mrb[26].mxu1 %v8048_v5 }
 0x613   : > { %6357 = vmatpush3.bf16.msra.mxu1 %v7712_v46  ;;  %5902 = vmatprep.mubr.f32.mxu1 %v6960_v19  ;;  %v4170_v46 = vsel %vm695_vm0, %v8050_v3, 0 }
 0x614   : > { %6359 = vmatprep.subr.bf16.mxu1 %v7718_v12 }
 0x617   : > { %6361 = vmatpush3.bf16.msra.mxu1 %v7718_v12 }
 0x618   : > { %6363 = vmatprep.subr.bf16.mxu1 %v7724_v9 }
 0x61b   : > { %6365 = vmatpush3.bf16.msra.mxu1 %v7724_v9 }
 0x61c   : > { %6367 = vmatprep.subr.bf16.mxu1 %v7728_v0 }
 0x61f   : > { %6369 = vmatpush3.bf16.msra.mxu1 %v7728_v0 }
 0x620   : > { %6371 = vmatprep.subr.bf16.mxu1 %v7730_v61 }
 0x623   : > { %6373 = vmatpush3.bf16.msra.mxu1 %v7730_v61 }
 0x624   : > { %6375 = vmatprep.subr.bf16.mxu1 %v7732_v54 }
 0x627   : > { %6377 = vmatpush3.bf16.msra.mxu1 %v7732_v54 }
 0x628   : > { %6379 = vmatprep.subr.bf16.mxu1 %v7734_v62 }
 0x62b   : > { %6381 = vmatpush3.bf16.msra.mxu1 %v7734_v62  ;;  %v4276_v62 = vand.u32 4294901760, %v7863_v36 }
 0x62c   : > { %6383 = vmatprep.subr.bf16.mxu1 %v7578_v55 }
 0x62e   : > { %5903 = vmatmul.mubr.f32.vlgmr.msra.gmra.mrb[24].mxu1 %v6963_v20 }
 0x62f   : > { %6385 = vmatpush3.bf16.msra.mxu1 %v7578_v55  ;;  %5905 = vmatprep.mubr.f32.mxu1 %v6969_v22 }
 0x630   : > { %6387 = vmatprep.subr.bf16.mxu1 %v7584_v33 }
 0x632   : > { %5906 = vmatmul.mubr.f32.gmra.mrb[26].mxu1 %v6972_v23 }
 0x633   : > { %6389 = vmatpush3.bf16.msra.mxu1 %v7584_v33  ;;  %5940 = vmatprep.mubr.f32.mxu1 %v6960_v19  ;;  %v8049_v19 = vld [vmem:[#allocation19_spill] sm:$0xff] }
 0x634   : > { %6391 = vmatprep.subr.bf16.mxu1 %v8041_v42  ;;  %v4164_v55 = vsel %vm695_vm0, %v8049_v19, 0 }
 0x635   : > { %v7828_v33 = vand.u32 4294901760, %v4164_v55 }
 0x637   : > { %6393 = vmatpush3.bf16.msra.mxu1 %v8041_v42  ;;  %v7831_v40 = vsub.f32 %v4164_v55, %v7828_v33 }
 0x638   : > { %6395 = vmatprep.subr.bf16.mxu1 %v8042_v30 }
 0x639   : > { %v4246_v39 = vand.u32 4294901760, %v7831_v40 }
 0x63b   : > { %6397 = vmatpush3.bf16.msra.mxu1 %v8042_v30  ;;  %v4277_v30 = vsub.f32 %v7863_v36, %v4276_v62 }
 0x63c   : > { %6399 = vmatprep.subr.bf16.mxu1 %v8043_v26 }
 0x63d   : > { %v4278_v3 = vand.u32 4294901760, %v4277_v30 }
 0x63f   : > { %6401 = vmatpush3.bf16.msra.mxu1 %v8043_v26 }
 0x640   : > { %6403 = vmatprep.subr.bf16.mxu1 %v8044_v27 }
 0x643   : > { %6405 = vmatpush3.bf16.msra.mxu1 %v8044_v27 }
 0x644   : > { %6407 = vmatprep.subr.bf16.mxu1 %v8045_v45 }
 0x647   : > { %6409 = vmatpush3.bf16.msra.mxu1 %v8045_v45 }
 0x648   : > { %6411 = vmatprep.subr.bf16.mxu1 %v7647_v14 }
 0x64b   : > { %6413 = vmatpush3.bf16.msra.mxu1 %v7647_v14  ;;  %v7836_v14 = vand.u32 4294901760, %v4170_v46 }
 0x64d   : > { %v7857_v28 = vsub.f32 %v4170_v46, %v7836_v14 }
 0x64e   : > { %5941 = vmatmul.mubr.f32.vlgmr.msra.gmra.mrb[24].mxu1 %v6963_v20  ;;  %v4247_v20 = vsub.f32 %v7831_v40, %v4246_v39 }
 0x64f   : > { %5943 = vmatprep.mubr.f32.mxu1 %v6969_v22  ;;  %v4266_v47 = vand.u32 4294901760, %v7857_v28 }
 0x650   : > { %v4248_v22 = vand.u32 4294901760, %v4247_v20 }
 0x651   : > { %v4267_v31 = vsub.f32 %v7857_v28, %v4266_v47 }
 0x652   : > { %5944 = vmatmul.mubr.f32.gmra.mrb[26].mxu1 %v6972_v23  ;;  %5954 = vmatprep.mubr.f32.mxu0 %v4248_v22  ;;  %v8051_v23 = vld [vmem:[#allocation20_spill] sm:$0xff]  ;;  %v4156_v22 = vpop.permute.xlu0 %4155 }
 0x653   : > { %6027 = vmatprep.mubr.f32.mxu1 %v7836_v14  ;;  %v4167_v38 = vsel %vm695_vm0, %v8051_v23, 0  ;;  %v4268_v45 = vand.u32 4294901760, %v4267_v31 }
 0x654   : > { %v7845_v18 = vand.u32 4294901760, %v4167_v38 }
 0x656   : > { %v7851_v16 = vsub.f32 %v4167_v38, %v7845_v18  ;;  %v4146_v23 = vpop.permute.xlu0 %4145  ;;  %v4161_v38 = vpop.permute.xlu1 %4160 }
 0x658   : > { %v4256_v53 = vand.u32 4294901760, %v7851_v16 }
 0x65a   : > { %v4257_v15 = vsub.f32 %v7851_v16, %v4256_v53 }
 0x65c   : > { %v4258_v37 = vand.u32 4294901760, %v4257_v15 }
 0x721   : > { %v5942_v35 = vpop.f32.mrb[24].mxu1 }
 0x722   : > { %v4135_v50 = vadd.f32 %v5942_v35, %v7747_v48  ;;  %v4112_v17 = vpop.f32.mrb[25].mxu1 }
 0x723   : > { %v4134_v60 = vadd.f32 %v4112_v17, %v7747_v48  ;;  %v4789_v17 = vstv %s6858_s16 }
 0x724   : > { %v4140_v59 = vmul.f32 %v6722_v57, %v4135_v50  ;;  %v1366_v50 = vstv %s6856_s15 }
 0x725   : > { %v4139_v58 = vmul.f32 %v6722_v57, %v4134_v60  ;;  %v5945_v1 = vpop.f32.mrb[26].mxu1 }
 0x726   : > { %v4179_v4 = vand.u32 4294901760, %v4140_v59  ;;  %v4137_v13 = vadd.f32 %v5945_v1, %v7747_v48  ;;  %v4124_v49 = vpop.f32.mrb[27].mxu1 }
 0x727   : > { %v4176_v10 = vand.u32 4294901760, %v4139_v58  ;;  %v4136_v2 = vadd.f32 %v4124_v49, %v7747_v48 }
 0x728   : > { %v4293_v7 = vsub.f32 %v4140_v59, %v4179_v4  ;;  %v4142_v43 = vmul.f32 %v6722_v57, %v4137_v13 }
 0x729   : > { %v7866_v12 = vpack.c.bf16 %v4179_v4, %v4176_v10  ;;  %v4286_v56 = vsub.f32 %v4139_v58, %v4176_v10  ;;  %v4141_v32 = vmul.f32 %v6722_v57, %v4136_v2  ;;  %v8055_v58 = vld [vmem:[#allocation32_spill] sm:$0xff] }
 0x72a   : > { %v4185_v9 = vand.u32 4294901760, %v4142_v43  ;;  %v4294_v0 = vand.u32 4294901760, %v4293_v7  ;;  %v1368_v1 = vmul.f32 %v8055_v58, %v1366_v50 }
 0x72b   : > { %v4182_v61 = vand.u32 4294901760, %v4141_v32  ;;  %6415 = vmatprep.subr.bf16.mxu0 %v7866_v12  ;;  %6462 = vmatprep.subr.bf16.mxu1 %v7866_v12  ;;  %v4287_v54 = vand.u32 4294901760, %v4286_v56  ;;  %v6430_v51 = vpack.c.bf16 %v4293_v7, %v4286_v56 }
 0x72c   : > { %v4307_v52 = vsub.f32 %v4142_v43, %v4185_v9  ;;  %6417 = vmatpush3.bf16.msra.mxu0 %v7866_v12  ;;  %6464 = vmatpush3.bf16.msra.mxu1 %v7866_v12  ;;  %v4295_v21 = vsub.f32 %v4293_v7, %v4294_v0  ;;  %v6723_v7 = vld [vmem:[%s6948_s25 + $0x18] sm:$0xff] }
 0x72d   : > { %v6418_v8 = vpack.c.bf16 %v4185_v9, %v4182_v61  ;;  %v4300_v29 = vsub.f32 %v4141_v32, %v4182_v61  ;;  %v4288_v44 = vsub.f32 %v4286_v56, %v4287_v54  ;;  %v6446_v48 = vpack.c.bf16 %v4294_v0, %v4287_v54  ;;  %v6724_v56 = vld [vmem:[%s6948_s25 + $0x10] sm:$0xff]  ;;  %v6725_v0 = vld [vmem:[%s6948_s25 + $0x8] sm:$0xff] }
 0x72e   : > { %v4296_v25 = vand.u32 4294901760, %v4295_v21  ;;  %v4308_v41 = vand.u32 4294901760, %v4307_v52  ;;  %v1372_v61 = vadd.f32 %v6725_v0, %v1368_v1 }
 0x72f   : > { %6419 = vmatprep.subr.bf16.mxu0 %v6418_v8  ;;  %6463 = vmatprep.subr.bf16.mxu1 %v6418_v8  ;;  %v4289_v42 = vand.u32 4294901760, %v4288_v44  ;;  %v4301_v26 = vand.u32 4294901760, %v4300_v29  ;;  %v6434_v27 = vpack.c.bf16 %v4307_v52, %v4300_v29 }
 0x730   : > { %6421 = vmatpush3.bf16.msra.mxu0 %v6418_v8  ;;  %6465 = vmatpush3.bf16.msra.mxu1 %v6418_v8  ;;  %v4309_v24 = vsub.f32 %v4307_v52, %v4308_v41 }
 0x731   : > { %v6422_v11 = vpack.c.bf16 %v4296_v25, %v4289_v42  ;;  %v4302_v5 = vsub.f32 %v4300_v29, %v4301_v26  ;;  %v6450_v19 = vpack.c.bf16 %v4308_v41, %v4301_v26 }
 0x732   : > { %v4310_v55 = vand.u32 4294901760, %v4309_v24 }
 0x733   : > { %5955 = vmatmul.mubr.f32.vlgmr.msra.gmra.mrb[20].mxu0 %v4258_v37  ;;  %6423 = vmatprep.subr.bf16.mxu0 %v6422_v11  ;;  %v4303_v46 = vand.u32 4294901760, %v4302_v5 }
 0x734   : > { %6425 = vmatpush3.bf16.msra.mxu0 %v6422_v11  ;;  %5957 = vmatprep.mubr.f32.mxu0 %v4268_v45 }
 0x735   : > { %v6426_v20 = vpack.c.bf16 %v4310_v55, %v4303_v46  ;;  %6028 = vmatmul.mubr.f32.vlgmr.msra.gmra.mrb[28].mxu1 %v7854_v63 }
 0x737   : > { %5958 = vmatmul.mubr.f32.gmra.mrb[22].mxu0 %v4278_v3  ;;  %6427 = vmatprep.subr.bf16.mxu0 %v6426_v20 }
 0x738   : > { %6429 = vmatpush3.bf16.msra.mxu0 %v6426_v20  ;;  %5968 = vmatprep.mubr.f32.mxu0 %v7828_v33 }
 0x739   : > { %6431 = vmatprep.subr.bf16.mxu0 %v6430_v51 }
 0x73b   : > { %5969 = vmatmul.mubr.f32.vlgmr.msra.gmra.mrb[20].mxu0 %v7845_v18 }
 0x73c   : > { %6433 = vmatpush3.bf16.msra.mxu0 %v6430_v51  ;;  %5971 = vmatprep.mubr.f32.mxu0 %v7836_v14  ;;  %v6726_v51 = vld [vmem:[%s6948_s25] sm:$0xff] }
 0x73d   : > { %6435 = vmatprep.subr.bf16.mxu0 %v6434_v27 }
 0x73f   : > { %5972 = vmatmul.mubr.f32.gmra.mrb[22].mxu0 %v7854_v63 }
 0x740   : > { %6437 = vmatpush3.bf16.msra.mxu0 %v6434_v27  ;;  %5982 = vmatprep.mubr.f32.mxu0 %v7831_v40 }
 0x741   : > { %6439 = vmatprep.subr.bf16.mxu0 %v7866_v12 }
 0x743   : > { %5983 = vmatmul.mubr.f32.vlgmr.msra.gmra.mrb[20].mxu0 %v7851_v16  ;;  %v8053_v16 = vld [vmem:[#allocation34_spill] sm:$0xff] }
 0x744   : > { %6441 = vmatpush3.bf16.msra.mxu0 %v7866_v12  ;;  %5985 = vmatprep.mubr.f32.mxu0 %v7857_v28  ;;  %v1370_v57 = vmul.f32 %v8053_v16, %v1366_v50 }
 0x745   : > { %6443 = vmatprep.subr.bf16.mxu0 %v6418_v8 }
 0x746   : > { %v1374_v43 = vadd.f32 %v6723_v7, %v1370_v57 }
 0x747   : > { %5986 = vmatmul.mubr.f32.gmra.mrb[22].mxu0 %v7863_v36 }
 0x748   : > { %6445 = vmatpush3.bf16.msra.mxu0 %v6418_v8  ;;  %5996 = vmatprep.mubr.f32.mxu0 %v4246_v39 }
 0x749   : > { %6447 = vmatprep.subr.bf16.mxu0 %v6446_v48 }
 0x74b   : > { %5997 = vmatmul.mubr.f32.vlgmr.msra.gmra.mrb[20].mxu0 %v4256_v53  ;;  %v8056_v53 = vld [vmem:[#allocation33_spill] sm:$0xff] }
 0x74c   : > { %6449 = vmatpush3.bf16.msra.mxu0 %v6446_v48  ;;  %5999 = vmatprep.mubr.f32.mxu0 %v4266_v47  ;;  %v1367_v10 = vmul.f32 %v1366_v50, %v8056_v53 }
 0x74d   : > { %6451 = vmatprep.subr.bf16.mxu0 %v6450_v19 }
 0x74e   : > { %v1371_v52 = vadd.f32 %v6726_v51, %v1367_v10 }
 0x74f   : > { %6000 = vmatmul.mubr.f32.gmra.mrb[22].mxu0 %v4276_v62 }
 0x750   : > { %6453 = vmatpush3.bf16.msra.mxu0 %v6450_v19  ;;  %6010 = vmatprep.mubr.f32.mxu0 %v7828_v33 }
 0x751   : > { %6455 = vmatprep.subr.bf16.mxu0 %v7866_v12 }
 0x753   : > { %6011 = vmatmul.mubr.f32.vlgmr.msra.gmra.mrb[20].mxu0 %v7845_v18 }
 0x754   : > { %6457 = vmatpush3.bf16.msra.mxu0 %v7866_v12  ;;  %6013 = vmatprep.mubr.f32.mxu0 %v7836_v14 }
 0x755   : > { %6459 = vmatprep.subr.bf16.mxu0 %v6418_v8 }
 0x757   : > { %6014 = vmatmul.mubr.f32.gmra.mrb[22].mxu0 %v7854_v63  ;;  %v8054_v63 = vld [vmem:[#allocation35_spill] sm:$0xff] }
 0x758   : > { %6461 = vmatpush3.bf16.msra.mxu0 %v6418_v8  ;;  %6024 = vmatprep.mubr.f32.mxu0 %v7828_v33  ;;  %v1369_v33 = vmul.f32 %v1366_v50, %v8054_v63 }
 0x75a   : > { %v1373_v32 = vadd.f32 %v6724_v56, %v1369_v33 }
 0x75b   : > { %6025 = vmatmul.mubr.f32.vlgmr.msra.gmra.mrb[20].mxu0 %v7845_v18  ;;  %v4151_v18 = vpop.permute.xlu0 %4150 }
 0x808   : > { %v6029_v40 = vpop.f32.mrb[28].mxu1 }
 0x809   : > { %v4779_v39 = vpop.f32.mrb[29].mxu1 }
 0x82a   : > { %v6015_v34 = vpop.f32.mrb[22].mxu0 }
 0x82b   : > { %v6488_v6 = vadd.f32 %v6015_v34, %v4161_v38  ;;  %v4686_v35 = vpop.f32.mrb[23].mxu0 }
 0x82c   : > { %v6490_v14 = vadd.f32 %v4686_v35, %v4156_v22 }
 0x82d   : > { %v6489_v60 = vadd.f32 %v6488_v6, %v6029_v40 }
 0x82e   : > { %v6491_v59 = vadd.f32 %v6490_v14, %v4779_v39  ;;  %v6026_v28 = vpop.f32.mrb[20].mxu0 }
 0x82f   : > { %v4793_v4 = vmul.f32 %v6489_v60, %v4789_v17  ;;  %v6486_v13 = vadd.f32 %v6026_v28, %v4151_v18  ;;  %v4767_v49 = vpop.f32.mrb[21].mxu0 }
 0x830   : > { %v4792_v2 = vmul.f32 %v6491_v59, %v4789_v17  ;;  %v6487_v36 = vadd.f32 %v4767_v49, %v4146_v23 }
 0x831   : > { %v4797_v47 = vadd.f32 %v6723_v7, %v4793_v4  ;;  %v4791_v12 = vmul.f32 %v6486_v13, %v4789_v17 }
 0x832   : > { %v4796_v9 = vadd.f32 %v6724_v56, %v4792_v2  ;;  %v4790_v15 = vmul.f32 %v6487_v36, %v4789_v17 }
 0x833   : > { %v4801_v54 = vadd.f32 %v4797_v47, %v1374_v43  ;;  %v4795_v62 = vadd.f32 %v6725_v0, %v4791_v12 }
 0x834   : > { %v4800_v21 = vadd.f32 %v4796_v9, %v1373_v32  ;;  %v4794_v31 = vadd.f32 %v6726_v51, %v4790_v15  ;;  %73 = sbr.rel (!%p71_p13) target bundleno = 43 (0x2b), region = 62 }
 0x835   : > { %v4805_v8 = vmul.f32 0.5, %v4801_v54  ;;  %v4799_v29 = vadd.f32 %v4795_v62, %v1372_v61 }
 0x836   : > { %v4804_v44 = vmul.f32 0.5, %v4800_v21  ;;  %v4798_v48 = vadd.f32 %v4794_v31, %v1371_v52 }
 0x837   : > { %4810 = vst [vmem:[%s4806_s5 + $0x18] sm:$0xff] %v4805_v8  ;;  %v4803_v37 = vmul.f32 0.5, %v4799_v29 }
 0x838   : > { %4809 = vst [vmem:[%s4806_s5 + $0x10] sm:$0xff] %v4804_v44  ;;  %v4802_v25 = vmul.f32 0.5, %v4798_v48 }
 0x839   : > { %4808 = vst [vmem:[%s4806_s5 + $0x8] sm:$0xff] %v4803_v37 }
 0x83a   : > { %4807 = vst [vmem:[%s4806_s5] sm:$0xff] %v4802_v25 }
 0x83b   :  { %6772 = shalt.err (!%p6769_p4)
}
 0x83c   :  { %s6773_s7 = scalar_lea.hbm %s7941_s6, 4096 }
 0x83d   :  { %p6774_p5 = scmp.ne.s32.totalorder %s7941_s6, %s6773_s7  ;;  %p6777_p6 = scmp.lt.u32.totalorder %s6773_s7, %s7941_s6 }
 0x83f   :  { %p6779_p7 = pnand %p6777_p6, %p6774_p5 }
 0x841   :  { %6782 = shalt.err (!%p6779_p7)
}
 0x842   :  { %4822 = dma.vmem_to_hbm [thread:$0]  %s4817_s27, 4096, %s7941_s6, [#allocation4], %s6799_s11, %s6799_s11, %s6800_s12  }
 0x843   :  { %6791 = dma.done.wait [#allocation4], 4096  }
 0x844   :  { %6792 = vsyncadd [#allocation4], 4294963200 }
 0x845   :  { %4826 = vsyncpa [#allocation3], 1 }
 0x846   :  { %4827 = vsyncpa [#allocation4], 1 }
 0x847   :  { %4828 = vsyncpa [#allocation5], 1 }

</bundles_post_ra>
